<compile_context>
chip_gen: v6e
topology: v6e:2x2x1
jax: 0.10.0
libtpu: 0.0.40
codegen_flags: <defaults>
</compile_context>

<pallas_src>
import functools

import jax
import jax.numpy as jnp
from jax.experimental import pallas as pl
from jax.experimental.pallas import tpu as pltpu


# ----------------------------------------------------------------------------
# Fused kernel: per grid step (= one batch element) the whole forward pass runs
# out of VMEM.  Body is only 2-D matmuls + broadcast adds + LeakyReLU, which is
# the safest/most MXU-friendly Mosaic op set.
# ----------------------------------------------------------------------------
def _fused_kernel(*refs, k, slope):
    # refs = [x, B_0..B_{k-1}, P_0..P_{k-1}, dbias,
    #         S_up, S_dn, C1_0, C1_1, C1_2, shift1, C2_0, C2_1, C2_2, shift2, out]
    idx = 0
    x_ref = refs[idx]; idx += 1
    b_refs = refs[idx:idx + k]; idx += k
    p_refs = refs[idx:idx + k]; idx += k
    dbias_ref = refs[idx]; idx += 1
    s_up_ref = refs[idx]; idx += 1     # row-shift matrix for dh = 0 (eye k=-1)
    s_dn_ref = refs[idx]; idx += 1     # row-shift matrix for dh = 2 (eye k=+1)
    c1_refs = refs[idx:idx + 3]; idx += 3
    shift1_ref = refs[idx]; idx += 1
    c2_refs = refs[idx:idx + 3]; idx += 3
    shift2_ref = refs[idx]; idx += 1
    o_ref = refs[idx]

    f32 = jnp.float32
    x2d = x_ref[0]                                    # (H, Cin*W), cols = c*W + w

    # --- ConvTranspose2d(stride=2): sum over k row-phases of  P_i @ (x2d @ B_i) ---
    y = jnp.dot(p_refs[0][...],
                jnp.dot(x2d, b_refs[0][...], preferred_element_type=f32),
                preferred_element_type=f32)
    for i in range(1, k):
        y = y + jnp.dot(p_refs[i][...],
                        jnp.dot(x2d, b_refs[i][...], preferred_element_type=f32),
                        preferred_element_type=f32)
    y = y + dbias_ref[...]                            # (Ho, Cin*Wo)

    # --- ConvBlock: 3x3 conv (pad=1) as 3 banded matmuls + row-shift matmuls,
    #     BN scale pre-folded into the band matrices, epilogue = +shift, LeakyReLU.
    def conv_block(act, c_refs, shift_ref):
        t0 = jnp.dot(act, c_refs[0][...], preferred_element_type=f32)   # dh = 0
        t1 = jnp.dot(act, c_refs[1][...], preferred_element_type=f32)   # dh = 1
        t2 = jnp.dot(act, c_refs[2][...], preferred_element_type=f32)   # dh = 2
        out = (jnp.dot(s_up_ref[...], t0, preferred_element_type=f32)
               + t1
               + jnp.dot(s_dn_ref[...], t2, preferred_element_type=f32)
               + shift_ref[...])
        return jnp.where(out >= 0.0, out, slope * out)

    z = conv_block(y, c1_refs, shift1_ref)            # (Ho, Cout*Wo)
    o = conv_block(z, c2_refs, shift2_ref)            # (Ho, Cout*Wo)
    o_ref[0] = o.astype(o_ref.dtype)


# ----------------------------------------------------------------------------
# Wrapper: builds the small constant matrices (trace-time folding of the deconv
# taps, 3x3 W-taps and BatchNorm) and launches the fused Pallas kernel.
# ----------------------------------------------------------------------------
def deconv_hpgnn(x, params, *, slope=0.1, eps=1e-5):
    f32 = jnp.float32
    n, cin, h, w = x.shape
    wt = params["wt"]                                 # (Cin, Cd, k, k) -- PyTorch layout
    cin2, cd, kh, kw = wt.shape
    assert cin2 == cin and kh == kw, "ConvTranspose2d weight layout mismatch"
    k = kh
    ho = (h - 1) * 2 + k
    wo = (w - 1) * 2 + k

    # --- deconv scatter matrices: B_i (Cin*W, Cd*Wo), P_i (Ho, H) ----------------
    wcols = jnp.arange(wo)
    wrows = jnp.arange(w)
    sel = jnp.stack(
        [(wcols[None, :] == (2 * wrows[:, None] + j)).astype(f32) for j in range(k)],
        axis=0)                                       # (k, W, Wo): sel[j][w, 2w+j] = 1
    hrows = jnp.arange(ho)
    hcols = jnp.arange(h)
    b_mats, p_mats = [], []
    for i in range(k):
        bi = jnp.einsum('cdj,jwx->cwdx', wt[:, :, i, :].astype(f32), sel)
        b_mats.append(bi.reshape(cin * w, cd * wo))
        p_mats.append((hrows[:, None] == (2 * hcols[None, :] + i)).astype(f32))
    dbias_row = jnp.repeat(params["bt"].astype(f32), wo).reshape(1, cd * wo)

    # --- row-shift matrices shared by both 3x3 conv blocks (R = Ho) --------------
    s_up = jnp.eye(ho, ho, k=-1, dtype=f32)           # picks input row r-1
    s_dn = jnp.eye(ho, ho, k=1, dtype=f32)            # picks input row r+1

    # --- 3x3 conv + folded BN -> banded matrices C_dh (Cin*Wo, Cout*Wo) ----------
    band = jnp.stack(
        [(jnp.arange(wo)[:, None] == (jnp.arange(wo)[None, :] + dw - 1)).astype(f32)
         for dw in range(3)],
        axis=0)                                       # (3, Wo, Wo)

    def fold_conv_block(wc, bc, gamma, beta, rmean, rvar):
        cout_b, cin_b, _, _ = wc.shape
        scale = gamma.astype(f32) / jnp.sqrt(rvar.astype(f32) + eps)
        shift = (bc.astype(f32) - rmean.astype(f32)) * scale + beta.astype(f32)
        ws = wc.astype(f32) * scale[:, None, None, None]   # fold BN scale into weights
        mats = [jnp.einsum('ocd,dIO->cIoO', ws[:, :, dh, :], band)
                   .reshape(cin_b * wo, cout_b * wo)
                for dh in range(3)]
        return mats, jnp.repeat(shift, wo).reshape(1, cout_b * wo)

    c1_mats, shift1 = fold_conv_block(params["w1"], params["b1"], params["g1"],
                                      params["be1"], params["m1"], params["v1"])
    c2_mats, shift2 = fold_conv_block(params["w2"], params["b2"], params["g2"],
                                      params["be2"], params["m2"], params["v2"])
    cout = params["w2"].shape[0]

    # --- single boundary layout conversion: NCHW -> (N, H, Cin*W) ----------------
    x2d = jnp.transpose(x.astype(f32), (0, 2, 1, 3)).reshape(n, h, cin * w)

    operands = ([x2d] + b_mats + p_mats + [dbias_row, s_up, s_dn]
                + c1_mats + [shift1] + c2_mats + [shift2])
    in_specs = [pl.BlockSpec((1, h, cin * w), lambda i: (i, 0, 0))] + [
        pl.BlockSpec(op.shape, lambda i: (0, 0)) for op in operands[1:]
    ]
    out_spec = pl.BlockSpec((1, ho, cout * wo), lambda i: (i, 0, 0))

    out3 = pl.pallas_call(
        functools.partial(_fused_kernel, k=k, slope=slope),
        out_shape=jax.ShapeDtypeStruct((n, ho, cout * wo), f32),
        grid_spec=pltpu.PrefetchScalarGridSpec(
            num_scalar_prefetch=0,
            grid=(n,),                                 # batch on the grid (>=2 -> megacore)
            in_specs=in_specs,
            out_specs=out_spec,
        ),
        compiler_params=pltpu.CompilerParams(
            dimension_semantics=("parallel",),         # weights ~1.5 MB resident; well
        ),                                             # under the scoped-VMEM default
    )(*operands)

    # single boundary layout conversion back: (N, Ho, Cout*Wo) -> NCHW
    return out3.reshape(n, ho, cout, wo).transpose(0, 2, 1, 3)


# ----------------------------------------------------------------------------
# Pure-JAX reference (same math as the previously reviewed-correct version),
# used only for a numerical self-check in __main__.
# ----------------------------------------------------------------------------
def _reference_forward(x, params, slope=0.1, eps=1e-5):
    hi = jax.lax.Precision.HIGHEST
    n, cin, h, w = x.shape
    wt, bt = params["wt"], params["bt"]
    _, cd, k, _ = wt.shape
    ho, wo = (h - 1) * 2 + k, (w - 1) * 2 + k
    y = jnp.zeros((n, cd, ho, wo), jnp.float32)
    for i in range(k):
        for j in range(k):
            contrib = jnp.einsum('nchw,cd->ndhw', x, wt[:, :, i, j], precision=hi)
            y = y.at[:, :, i:i + 2 * h:2, j:j + 2 * w:2].add(contrib)
    y = y + bt.reshape(1, cd, 1, 1)

    def conv_block(a, wc, bc, g, be, m, v):
        ap = jnp.pad(a, ((0, 0), (0, 0), (1, 1), (1, 1)))
        out = jnp.zeros((a.shape[0], wc.shape[0], a.shape[2], a.shape[3]), jnp.float32)
        for dh in range(3):
            for dw in range(3):
                out = out + jnp.einsum(
                    'nchw,oc->nohw',
                    ap[:, :, dh:dh + a.shape[2], dw:dw + a.shape[3]],
                    wc[:, :, dh, dw], precision=hi)
        s = g / jnp.sqrt(v + eps)
        out = (out + bc[None, :, None, None] - m[None, :, None, None]) \
            * s[None, :, None, None] + be[None, :, None, None]
        return jnp.where(out >= 0, out, slope * out)

    y = conv_block(y, params["w1"], params["b1"], params["g1"], params["be1"],
                   params["m1"], params["v1"])
    y = conv_block(y, params["w2"], params["b2"], params["g2"], params["be2"],
                   params["m2"], params["v2"])
    return y


if __name__ == "__main__":
    in_fea, out_fea, kernel_size = 4, 8, 2
    n, h, w = 2, 16, 16

    key = jax.random.PRNGKey(0)
    ks = jax.random.split(key, 16)
    x = jax.random.normal(ks[0], (n, in_fea, h, w), jnp.float32)

    params = dict(
        # ConvTranspose2d(in_fea, in_fea, k, stride=2): weight (Cin, Cout, k, k)
        wt=jax.random.normal(ks[1], (in_fea, in_fea, kernel_size, kernel_size), jnp.float32) * 0.1,
        bt=jax.random.normal(ks[2], (in_fea,), jnp.float32) * 0.1,
        # ConvBlock 1: Conv2d(in_fea, out_fea, 3, 1, 1) + BN(out_fea) + LeakyReLU(0.1)
        w1=jax.random.normal(ks[3], (out_fea, in_fea, 3, 3), jnp.float32) * 0.1,
        b1=jax.random.normal(ks[4], (out_fea,), jnp.float32) * 0.1,
        g1=1.0 + 0.1 * jax.random.normal(ks[5], (out_fea,), jnp.float32),
        be1=0.1 * jax.random.normal(ks[6], (out_fea,), jnp.float32),
        m1=0.1 * jax.random.normal(ks[7], (out_fea,), jnp.float32),
        v1=0.5 + jax.random.uniform(ks[8], (out_fea,), jnp.float32),
        # ConvBlock 2: Conv2d(out_fea, out_fea, 3, 1, 1) + BN(out_fea) + LeakyReLU(0.1)
        w2=jax.random.normal(ks[9], (out_fea, out_fea, 3, 3), jnp.float32) * 0.1,
        b2=jax.random.normal(ks[10], (out_fea,), jnp.float32) * 0.1,
        g2=1.0 + 0.1 * jax.random.normal(ks[11], (out_fea,), jnp.float32),
        be2=0.1 * jax.random.normal(ks[12], (out_fea,), jnp.float32),
        m2=0.1 * jax.random.normal(ks[13], (out_fea,), jnp.float32),
        v2=0.5 + jax.random.uniform(ks[14], (out_fea,), jnp.float32),
    )

    fwd = jax.jit(deconv_hpgnn)
    y = fwd(x, params)
    jax.block_until_ready(y)

    expected_hw = (h - 1) * 2 + kernel_size
    assert y.shape == (n, out_fea, expected_hw, expected_hw), y.shape

    y_ref = _reference_forward(x, params)
    err = float(jnp.max(jnp.abs(y - y_ref)))
    assert err < 2e-3, f"max abs err {err}"
    print("KERNEL_OK")
</pallas_src>

<mosaic_0001>
module attributes {stable_mosaic.version = 11 : i64} {
  func.func @_fused_kernel(%arg0: i32, %arg1: memref<1x16x64xf32, #tpu.memory_space<vmem>>, %arg2: memref<64x128xf32, #tpu.memory_space<vmem>>, %arg3: memref<64x128xf32, #tpu.memory_space<vmem>>, %arg4: memref<32x16xf32, #tpu.memory_space<vmem>>, %arg5: memref<32x16xf32, #tpu.memory_space<vmem>>, %arg6: memref<1x128xf32, #tpu.memory_space<vmem>>, %arg7: memref<32x32xf32, #tpu.memory_space<vmem>>, %arg8: memref<32x32xf32, #tpu.memory_space<vmem>>, %arg9: memref<128x256xf32, #tpu.memory_space<vmem>>, %arg10: memref<128x256xf32, #tpu.memory_space<vmem>>, %arg11: memref<128x256xf32, #tpu.memory_space<vmem>>, %arg12: memref<1x256xf32, #tpu.memory_space<vmem>>, %arg13: memref<256x256xf32, #tpu.memory_space<vmem>>, %arg14: memref<256x256xf32, #tpu.memory_space<vmem>>, %arg15: memref<256x256xf32, #tpu.memory_space<vmem>>, %arg16: memref<1x256xf32, #tpu.memory_space<vmem>>, %arg17: memref<1x32x256xf32, #tpu.memory_space<vmem>>) attributes {dimension_semantics = [#tpu.dimension_semantics<parallel>], iteration_bounds = array<i64: 2>, scalar_prefetch = 0 : i64, scratch_operands = 0 : i64, tpu.core_type = #tpu.core_type<tc>, window_params = [{transform_indices = @transform_0, window_bounds = array<i64: 1, 16, 64>}, {pipeline_mode = #tpu.pipeline_mode<synchronous>, transform_indices = @transform_1, window_bounds = array<i64: 64, 128>}, {pipeline_mode = #tpu.pipeline_mode<synchronous>, transform_indices = @transform_2, window_bounds = array<i64: 64, 128>}, {pipeline_mode = #tpu.pipeline_mode<synchronous>, transform_indices = @transform_3, window_bounds = array<i64: 32, 16>}, {pipeline_mode = #tpu.pipeline_mode<synchronous>, transform_indices = @transform_4, window_bounds = array<i64: 32, 16>}, {pipeline_mode = #tpu.pipeline_mode<synchronous>, transform_indices = @transform_5, window_bounds = array<i64: 1, 128>}, {pipeline_mode = #tpu.pipeline_mode<synchronous>, transform_indices = @transform_6, window_bounds = array<i64: 32, 32>}, {pipeline_mode = #tpu.pipeline_mode<synchronous>, transform_indices = @transform_7, window_bounds = array<i64: 32, 32>}, {pipeline_mode = #tpu.pipeline_mode<synchronous>, transform_indices = @transform_8, window_bounds = array<i64: 128, 256>}, {pipeline_mode = #tpu.pipeline_mode<synchronous>, transform_indices = @transform_9, window_bounds = array<i64: 128, 256>}, {pipeline_mode = #tpu.pipeline_mode<synchronous>, transform_indices = @transform_10, window_bounds = array<i64: 128, 256>}, {pipeline_mode = #tpu.pipeline_mode<synchronous>, transform_indices = @transform_11, window_bounds = array<i64: 1, 256>}, {pipeline_mode = #tpu.pipeline_mode<synchronous>, transform_indices = @transform_12, window_bounds = array<i64: 256, 256>}, {pipeline_mode = #tpu.pipeline_mode<synchronous>, transform_indices = @transform_13, window_bounds = array<i64: 256, 256>}, {pipeline_mode = #tpu.pipeline_mode<synchronous>, transform_indices = @transform_14, window_bounds = array<i64: 256, 256>}, {pipeline_mode = #tpu.pipeline_mode<synchronous>, transform_indices = @transform_15, window_bounds = array<i64: 1, 256>}, {transform_indices = @transform_16, window_bounds = array<i64: 1, 32, 256>}]} {
    %c0 = arith.constant 0 : index
    %c0_0 = arith.constant 0 : index
    %c0_1 = arith.constant 0 : index
    %0 = vector.load %arg1[%c0, %c0_0, %c0_1] : memref<1x16x64xf32, #tpu.memory_space<vmem>>, vector<1x16x64xf32>
    %1 = vector.shape_cast %0 : vector<1x16x64xf32> to vector<16x64xf32>
    %c0_2 = arith.constant 0 : index
    %c0_3 = arith.constant 0 : index
    %2 = vector.load %arg4[%c0_2, %c0_3] : memref<32x16xf32, #tpu.memory_space<vmem>>, vector<32x16xf32>
    %c0_4 = arith.constant 0 : index
    %c0_5 = arith.constant 0 : index
    %3 = vector.load %arg2[%c0_4, %c0_5] : memref<64x128xf32, #tpu.memory_space<vmem>>, vector<64x128xf32>
    %cst = arith.constant dense<0.000000e+00> : vector<16x128xf32>
    %4 = tpu.matmul %1, %3, %cst {dimension_numbers = #tpu.dot_dimension_numbers<[1], [0], [0], [1], [0, 0, 1, 1], [], []>} : vector<16x64xf32>, vector<64x128xf32>, vector<16x128xf32> -> vector<16x128xf32>
    %cst_6 = arith.constant dense<0.000000e+00> : vector<32x128xf32>
    %5 = tpu.matmul %2, %4, %cst_6 {dimension_numbers = #tpu.dot_dimension_numbers<[1], [0], [0], [1], [0, 0, 1, 1], [], []>} : vector<32x16xf32>, vector<16x128xf32>, vector<32x128xf32> -> vector<32x128xf32>
    %c0_7 = arith.constant 0 : index
    %c0_8 = arith.constant 0 : index
    %6 = vector.load %arg5[%c0_7, %c0_8] : memref<32x16xf32, #tpu.memory_space<vmem>>, vector<32x16xf32>
    %c0_9 = arith.constant 0 : index
    %c0_10 = arith.constant 0 : index
    %7 = vector.load %arg3[%c0_9, %c0_10] : memref<64x128xf32, #tpu.memory_space<vmem>>, vector<64x128xf32>
    %cst_11 = arith.constant dense<0.000000e+00> : vector<16x128xf32>
    %8 = tpu.matmul %1, %7, %cst_11 {dimension_numbers = #tpu.dot_dimension_numbers<[1], [0], [0], [1], [0, 0, 1, 1], [], []>} : vector<16x64xf32>, vector<64x128xf32>, vector<16x128xf32> -> vector<16x128xf32>
    %cst_12 = arith.constant dense<0.000000e+00> : vector<32x128xf32>
    %9 = tpu.matmul %6, %8, %cst_12 {dimension_numbers = #tpu.dot_dimension_numbers<[1], [0], [0], [1], [0, 0, 1, 1], [], []>} : vector<32x16xf32>, vector<16x128xf32>, vector<32x128xf32> -> vector<32x128xf32>
    %10 = arith.addf %5, %9 : vector<32x128xf32>
    %c0_13 = arith.constant 0 : index
    %c0_14 = arith.constant 0 : index
    %11 = vector.load %arg6[%c0_13, %c0_14] : memref<1x128xf32, #tpu.memory_space<vmem>>, vector<1x128xf32>
    %12 = vector.broadcast %11 : vector<1x128xf32> to vector<32x128xf32>
    %13 = arith.addf %10, %12 : vector<32x128xf32>
    %c0_15 = arith.constant 0 : index
    %c0_16 = arith.constant 0 : index
    %14 = vector.load %arg9[%c0_15, %c0_16] : memref<128x256xf32, #tpu.memory_space<vmem>>, vector<128x256xf32>
    %cst_17 = arith.constant dense<0.000000e+00> : vector<32x256xf32>
    %15 = tpu.matmul %13, %14, %cst_17 {dimension_numbers = #tpu.dot_dimension_numbers<[1], [0], [0], [1], [0, 0, 1, 1], [], []>} : vector<32x128xf32>, vector<128x256xf32>, vector<32x256xf32> -> vector<32x256xf32>
    %c0_18 = arith.constant 0 : index
    %c0_19 = arith.constant 0 : index
    %16 = vector.load %arg10[%c0_18, %c0_19] : memref<128x256xf32, #tpu.memory_space<vmem>>, vector<128x256xf32>
    %cst_20 = arith.constant dense<0.000000e+00> : vector<32x256xf32>
    %17 = tpu.matmul %13, %16, %cst_20 {dimension_numbers = #tpu.dot_dimension_numbers<[1], [0], [0], [1], [0, 0, 1, 1], [], []>} : vector<32x128xf32>, vector<128x256xf32>, vector<32x256xf32> -> vector<32x256xf32>
    %c0_21 = arith.constant 0 : index
    %c0_22 = arith.constant 0 : index
    %18 = vector.load %arg11[%c0_21, %c0_22] : memref<128x256xf32, #tpu.memory_space<vmem>>, vector<128x256xf32>
    %cst_23 = arith.constant dense<0.000000e+00> : vector<32x256xf32>
    %19 = tpu.matmul %13, %18, %cst_23 {dimension_numbers = #tpu.dot_dimension_numbers<[1], [0], [0], [1], [0, 0, 1, 1], [], []>} : vector<32x128xf32>, vector<128x256xf32>, vector<32x256xf32> -> vector<32x256xf32>
    %c0_24 = arith.constant 0 : index
    %c0_25 = arith.constant 0 : index
    %20 = vector.load %arg7[%c0_24, %c0_25] : memref<32x32xf32, #tpu.memory_space<vmem>>, vector<32x32xf32>
    %cst_26 = arith.constant dense<0.000000e+00> : vector<32x256xf32>
    %21 = tpu.matmul %20, %15, %cst_26 {dimension_numbers = #tpu.dot_dimension_numbers<[1], [0], [0], [1], [0, 0, 1, 1], [], []>} : vector<32x32xf32>, vector<32x256xf32>, vector<32x256xf32> -> vector<32x256xf32>
    %22 = arith.addf %21, %17 : vector<32x256xf32>
    %c0_27 = arith.constant 0 : index
    %c0_28 = arith.constant 0 : index
    %23 = vector.load %arg8[%c0_27, %c0_28] : memref<32x32xf32, #tpu.memory_space<vmem>>, vector<32x32xf32>
    %cst_29 = arith.constant dense<0.000000e+00> : vector<32x256xf32>
    %24 = tpu.matmul %23, %19, %cst_29 {dimension_numbers = #tpu.dot_dimension_numbers<[1], [0], [0], [1], [0, 0, 1, 1], [], []>} : vector<32x32xf32>, vector<32x256xf32>, vector<32x256xf32> -> vector<32x256xf32>
    %25 = arith.addf %22, %24 : vector<32x256xf32>
    %c0_30 = arith.constant 0 : index
    %c0_31 = arith.constant 0 : index
    %26 = vector.load %arg12[%c0_30, %c0_31] : memref<1x256xf32, #tpu.memory_space<vmem>>, vector<1x256xf32>
    %27 = vector.broadcast %26 : vector<1x256xf32> to vector<32x256xf32>
    %28 = arith.addf %25, %27 : vector<32x256xf32>
    %cst_32 = arith.constant 0.000000e+00 : f32
    %29 = vector.broadcast %cst_32 : f32 to vector<32x256xf32>
    %30 = arith.cmpf oge, %28, %29 : vector<32x256xf32>
    %cst_33 = arith.constant 1.000000e-01 : f32
    %31 = vector.broadcast %cst_33 : f32 to vector<32x256xf32>
    %32 = arith.mulf %31, %28 : vector<32x256xf32>
    %33 = arith.select %30, %28, %32 : vector<32x256xi1>, vector<32x256xf32>
    %c0_34 = arith.constant 0 : index
    %c0_35 = arith.constant 0 : index
    %34 = vector.load %arg13[%c0_34, %c0_35] : memref<256x256xf32, #tpu.memory_space<vmem>>, vector<256x256xf32>
    %cst_36 = arith.constant dense<0.000000e+00> : vector<32x256xf32>
    %35 = tpu.matmul %33, %34, %cst_36 {dimension_numbers = #tpu.dot_dimension_numbers<[1], [0], [0], [1], [0, 0, 1, 1], [], []>} : vector<32x256xf32>, vector<256x256xf32>, vector<32x256xf32> -> vector<32x256xf32>
    %c0_37 = arith.constant 0 : index
    %c0_38 = arith.constant 0 : index
    %36 = vector.load %arg14[%c0_37, %c0_38] : memref<256x256xf32, #tpu.memory_space<vmem>>, vector<256x256xf32>
    %cst_39 = arith.constant dense<0.000000e+00> : vector<32x256xf32>
    %37 = tpu.matmul %33, %36, %cst_39 {dimension_numbers = #tpu.dot_dimension_numbers<[1], [0], [0], [1], [0, 0, 1, 1], [], []>} : vector<32x256xf32>, vector<256x256xf32>, vector<32x256xf32> -> vector<32x256xf32>
    %c0_40 = arith.constant 0 : index
    %c0_41 = arith.constant 0 : index
    %38 = vector.load %arg15[%c0_40, %c0_41] : memref<256x256xf32, #tpu.memory_space<vmem>>, vector<256x256xf32>
    %cst_42 = arith.constant dense<0.000000e+00> : vector<32x256xf32>
    %39 = tpu.matmul %33, %38, %cst_42 {dimension_numbers = #tpu.dot_dimension_numbers<[1], [0], [0], [1], [0, 0, 1, 1], [], []>} : vector<32x256xf32>, vector<256x256xf32>, vector<32x256xf32> -> vector<32x256xf32>
    %c0_43 = arith.constant 0 : index
    %c0_44 = arith.constant 0 : index
    %40 = vector.load %arg7[%c0_43, %c0_44] : memref<32x32xf32, #tpu.memory_space<vmem>>, vector<32x32xf32>
    %cst_45 = arith.constant dense<0.000000e+00> : vector<32x256xf32>
    %41 = tpu.matmul %40, %35, %cst_45 {dimension_numbers = #tpu.dot_dimension_numbers<[1], [0], [0], [1], [0, 0, 1, 1], [], []>} : vector<32x32xf32>, vector<32x256xf32>, vector<32x256xf32> -> vector<32x256xf32>
    %42 = arith.addf %41, %37 : vector<32x256xf32>
    %c0_46 = arith.constant 0 : index
    %c0_47 = arith.constant 0 : index
    %43 = vector.load %arg8[%c0_46, %c0_47] : memref<32x32xf32, #tpu.memory_space<vmem>>, vector<32x32xf32>
    %cst_48 = arith.constant dense<0.000000e+00> : vector<32x256xf32>
    %44 = tpu.matmul %43, %39, %cst_48 {dimension_numbers = #tpu.dot_dimension_numbers<[1], [0], [0], [1], [0, 0, 1, 1], [], []>} : vector<32x32xf32>, vector<32x256xf32>, vector<32x256xf32> -> vector<32x256xf32>
    %45 = arith.addf %42, %44 : vector<32x256xf32>
    %c0_49 = arith.constant 0 : index
    %c0_50 = arith.constant 0 : index
    %46 = vector.load %arg16[%c0_49, %c0_50] : memref<1x256xf32, #tpu.memory_space<vmem>>, vector<1x256xf32>
    %47 = vector.broadcast %46 : vector<1x256xf32> to vector<32x256xf32>
    %48 = arith.addf %45, %47 : vector<32x256xf32>
    %cst_51 = arith.constant 0.000000e+00 : f32
    %49 = vector.broadcast %cst_51 : f32 to vector<32x256xf32>
    %50 = arith.cmpf oge, %48, %49 : vector<32x256xf32>
    %cst_52 = arith.constant 1.000000e-01 : f32
    %51 = vector.broadcast %cst_52 : f32 to vector<32x256xf32>
    %52 = arith.mulf %51, %48 : vector<32x256xf32>
    %53 = arith.select %50, %48, %52 : vector<32x256xi1>, vector<32x256xf32>
    %c0_53 = arith.constant 0 : index
    %c0_54 = arith.constant 0 : index
    %c0_55 = arith.constant 0 : index
    %54 = vector.load %arg17[%c0_53, %c0_54, %c0_55] : memref<1x32x256xf32, #tpu.memory_space<vmem>>, vector<1x32x256xf32>
    %55 = vector.shape_cast %54 : vector<1x32x256xf32> to vector<32x256xf32>
    %56 = vector.shape_cast %53 : vector<32x256xf32> to vector<1x32x256xf32>
    tpu.vector_store %arg17[%c0_53, %c0_54, %c0_55], %56 {strides = array<i32>} : memref<1x32x256xf32, #tpu.memory_space<vmem>>, vector<1x32x256xf32>,
    return
  }
  func.func @transform_0(%arg0: i32) -> (i32, i32, i32) {
    %c0_i32 = arith.constant 0 : i32
    %c0_i32_0 = arith.constant 0 : i32
    %c0_i32_1 = arith.constant 0 : i32
    return %arg0, %c0_i32, %c0_i32_0 : i32, i32, i32
  }
  func.func @transform_1(%arg0: i32) -> (i32, i32) {
    %c0_i32 = arith.constant 0 : i32
    %c0_i32_0 = arith.constant 0 : i32
    %c0_i32_1 = arith.constant 0 : i32
    return %c0_i32, %c0_i32_0 : i32, i32
  }
  func.func @transform_2(%arg0: i32) -> (i32, i32) {
    %c0_i32 = arith.constant 0 : i32
    %c0_i32_0 = arith.constant 0 : i32
    %c0_i32_1 = arith.constant 0 : i32
    return %c0_i32, %c0_i32_0 : i32, i32
  }
  func.func @transform_3(%arg0: i32) -> (i32, i32) {
    %c0_i32 = arith.constant 0 : i32
    %c0_i32_0 = arith.constant 0 : i32
    %c0_i32_1 = arith.constant 0 : i32
    return %c0_i32, %c0_i32_0 : i32, i32
  }
  func.func @transform_4(%arg0: i32) -> (i32, i32) {
    %c0_i32 = arith.constant 0 : i32
    %c0_i32_0 = arith.constant 0 : i32
    %c0_i32_1 = arith.constant 0 : i32
    return %c0_i32, %c0_i32_0 : i32, i32
  }
  func.func @transform_5(%arg0: i32) -> (i32, i32) {
    %c0_i32 = arith.constant 0 : i32
    %c0_i32_0 = arith.constant 0 : i32
    %c0_i32_1 = arith.constant 0 : i32
    return %c0_i32, %c0_i32_0 : i32, i32
  }
  func.func @transform_6(%arg0: i32) -> (i32, i32) {
    %c0_i32 = arith.constant 0 : i32
    %c0_i32_0 = arith.constant 0 : i32
    %c0_i32_1 = arith.constant 0 : i32
    return %c0_i32, %c0_i32_0 : i32, i32
  }
  func.func @transform_7(%arg0: i32) -> (i32, i32) {
    %c0_i32 = arith.constant 0 : i32
    %c0_i32_0 = arith.constant 0 : i32
    %c0_i32_1 = arith.constant 0 : i32
    return %c0_i32, %c0_i32_0 : i32, i32
  }
  func.func @transform_8(%arg0: i32) -> (i32, i32) {
    %c0_i32 = arith.constant 0 : i32
    %c0_i32_0 = arith.constant 0 : i32
    %c0_i32_1 = arith.constant 0 : i32
    return %c0_i32, %c0_i32_0 : i32, i32
  }
  func.func @transform_9(%arg0: i32) -> (i32, i32) {
    %c0_i32 = arith.constant 0 : i32
    %c0_i32_0 = arith.constant 0 : i32
    %c0_i32_1 = arith.constant 0 : i32
    return %c0_i32, %c0_i32_0 : i32, i32
  }
  func.func @transform_10(%arg0: i32) -> (i32, i32) {
    %c0_i32 = arith.constant 0 : i32
    %c0_i32_0 = arith.constant 0 : i32
    %c0_i32_1 = arith.constant 0 : i32
    return %c0_i32, %c0_i32_0 : i32, i32
  }
  func.func @transform_11(%arg0: i32) -> (i32, i32) {
    %c0_i32 = arith.constant 0 : i32
    %c0_i32_0 = arith.constant 0 : i32
    %c0_i32_1 = arith.constant 0 : i32
    return %c0_i32, %c0_i32_0 : i32, i32
  }
  func.func @transform_12(%arg0: i32) -> (i32, i32) {
    %c0_i32 = arith.constant 0 : i32
    %c0_i32_0 = arith.constant 0 : i32
    %c0_i32_1 = arith.constant 0 : i32
    return %c0_i32, %c0_i32_0 : i32, i32
  }
  func.func @transform_13(%arg0: i32) -> (i32, i32) {
    %c0_i32 = arith.constant 0 : i32
    %c0_i32_0 = arith.constant 0 : i32
    %c0_i32_1 = arith.constant 0 : i32
    return %c0_i32, %c0_i32_0 : i32, i32
  }
  func.func @transform_14(%arg0: i32) -> (i32, i32) {
    %c0_i32 = arith.constant 0 : i32
    %c0_i32_0 = arith.constant 0 : i32
    %c0_i32_1 = arith.constant 0 : i32
    return %c0_i32, %c0_i32_0 : i32, i32
  }
  func.func @transform_15(%arg0: i32) -> (i32, i32) {
    %c0_i32 = arith.constant 0 : i32
    %c0_i32_0 = arith.constant 0 : i32
    %c0_i32_1 = arith.constant 0 : i32
    return %c0_i32, %c0_i32_0 : i32, i32
  }
  func.func @transform_16(%arg0: i32) -> (i32, i32, i32) {
    %c0_i32 = arith.constant 0 : i32
    %c0_i32_0 = arith.constant 0 : i32
    %c0_i32_1 = arith.constant 0 : i32
    return %arg0, %c0_i32, %c0_i32_0 : i32, i32, i32
  }
}

</mosaic_0001>

<bundles_post_ra>
// kernel: deconv_hpgnn.1
= control target key start
LH: loop header
LB: loop body
LE: loop exit
PB: predicated region body
PF: predicated region fallthrough
CT: control target
= control target key end

     0   :  { %s2524_s21 = smov 0   ;;  %s3687_s0 = inlined_call_operand.vmem [shape: f32[2,16,64], index: 0, kind: input, shape index: {}]   ;;  %s3688_s1 = inlined_call_operand.vmem [shape: f32[64,128], index: 1, kind: input, shape index: {}]   ;;  %s3689_s2 = inlined_call_operand.vmem [shape: f32[64,128], index: 2, kind: input, shape index: {}]   ;;  %s3690_s3 = inlined_call_operand.vmem [shape: f32[32,16], index: 3, kind: input, shape index: {}]   ;;  %s3691_s4 = inlined_call_operand.vmem [shape: f32[32,16], index: 4, kind: input, shape index: {}]   ;;  %s3692_s5 = inlined_call_operand.vmem [shape: f32[1,128], index: 5, kind: input, shape index: {}]   ;;  %s3693_s6 = inlined_call_operand.vmem [shape: f32[32,32], index: 6, kind: input, shape index: {}]   ;;  %s3694_s7 = inlined_call_operand.vmem [shape: f32[32,32], index: 7, kind: input, shape index: {}]   ;;  %s3695_s8 = inlined_call_operand.vmem [shape: f32[128,256], index: 8, kind: input, shape index: {}]   ;;  %s3696_s9 = inlined_call_operand.vmem [shape: f32[128,256], index: 9, kind: input, shape index: {}]   ;;  %s3697_s10 = inlined_call_operand.vmem [shape: f32[128,256], index: 10, kind: input, shape index: {}]   ;;  %s3698_s11 = inlined_call_operand.vmem [shape: f32[1,256], index: 11, kind: input, shape index: {}]   ;;  %s3699_s12 = inlined_call_operand.vmem [shape: f32[256,256], index: 12, kind: input, shape index: {}]   ;;  %s3700_s13 = inlined_call_operand.vmem [shape: f32[256,256], index: 13, kind: input, shape index: {}]   ;;  %s3701_s14 = inlined_call_operand.vmem [shape: f32[256,256], index: 14, kind: input, shape index: {}]   ;;  %s3702_s15 = inlined_call_operand.vmem [shape: f32[1,256], index: 15, kind: input, shape index: {}]   ;;  %s3703_s16 = inlined_call_operand.vmem [shape: f32[2,32,256], index: 16, kind: output, shape index: {}]  }
   0x1   :  { %3704 = sst [smem:[#allocation2_spill]] %s3687_s0 }
   0x2 LB: > { %s2289_s22 = sadd.s32 4294967295, %s2436_s21   ;;  %p2293_p0 = scmp.ge.s32.totalorder %s2436_s21, 1  ;;  %s2436_s21 = sphi %s2524_s21, %s26_s21  }
   0x3   : > { %p462_p1 = scmp.lt.s32.totalorder %s2436_s21, 3 }
   0x5   : > { %p463_p2 = pnand %p2293_p0, %p462_p1 }
   0x6   : > { %p512_p3 = scmp.lt.s32.totalorder (!%p463_p2), %s2289_s22, 1  ;;  %s3705_s19 = sld [smem:[#allocation2_spill]] (!%p463_p2) }
   0x7   : > { %466 = sbr.rel (%p463_p2) target bundleno = 1387 (0x56b), region = 84 }
   0xc   : > { %v535_v0 = vld [vmem:[%s3688_s1 + $0x38] sm:$0xff]  ;;  %v534_v1 = vld [vmem:[%s3688_s1 + $0x30] sm:$0xff]  ;;  %v533_v2 = vld [vmem:[%s3688_s1 + $0x28] sm:$0xff]  ;;  %s3707_s22 = smov (!%p512_p3, %s2289_s22), 1  ;;  %vm536_vm0 = vcmask 523264   ;;  %vm705_vm1 = vcmask 130048  }
   0xd   : > { %2363 = vmatprep.subr.mxu1 %v535_v0  ;;  %v532_v3 = vld [vmem:[%s3688_s1 + $0x20] sm:$0xff]  ;;  %s2329_s0 = sshll.u32 %s3707_s22, 4  ;;  %v531_v4 = vld [vmem:[%s3688_s1 + $0x18] sm:$0xff]  ;;  %v530_v6 = vld [vmem:[%s3688_s1 + $0x10] sm:$0xff]  ;;  %vm1278_vm2 = vcmask 261120  }
   0xe   : > { %2364 = vmatpush3.msra.mxu1 %v535_v0  ;;  %s516_s20 = scalar_lea.vmem %s3705_s19, %s2329_s0  ;;  %v529_v7 = vld [vmem:[%s3688_s1 + $0x8] sm:$0xff]  ;;  %v528_v8 = vld [vmem:[%s3688_s1] sm:$0xff]  ;;  %v629_v10 = vld [vmem:[%s3689_s2 + $0x38] sm:$0xff] }
   0xf   : > { %2365 = vmatprep.subr.mxu1 %v534_v1  ;;  %v522_v5 = vld [vmem:[%s516_s20] sm:$0xff]  ;;  %v523_v9 = vld [vmem:[%s516_s20 + $0x8] sm:$0xff]  ;;  %v628_v11 = vld [vmem:[%s3689_s2 + $0x30] sm:$0xff]  ;;  %s2330_s20 = sshll.u32 %s3707_s22, 6 }
  0x10   : > { %2366 = vmatpush3.msra.mxu1 %v534_v1  ;;  %2379 = vmatprep.mubr.msk.f32.mxu1 %vm536_vm0, %v522_v5  ;;  %v627_v12 = vld [vmem:[%s3689_s2 + $0x28] sm:$0xff]  ;;  %v626_v13 = vld [vmem:[%s3689_s2 + $0x20] sm:$0xff]  ;;  %v625_v14 = vld [vmem:[%s3689_s2 + $0x18] sm:$0xff]  ;;  %s3674_s27 = scalar_lea.vmem %s3703_s16, %s2330_s20 }
  0x11   : > { %2367 = vmatprep.subr.mxu1 %v533_v2  ;;  %v624_v15 = vld [vmem:[%s3689_s2 + $0x10] sm:$0xff]  ;;  %v623_v16 = vld [vmem:[%s3689_s2 + $0x8] sm:$0xff]  ;;  %v622_v17 = vld [vmem:[%s3689_s2] sm:$0xff] }
  0x12   : > { %2368 = vmatpush3.msra.mxu1 %v533_v2  ;;  %v524_v18 = vld [vmem:[%s3690_s3] sm:$0xff]  ;;  %v525_v22 = vld [vmem:[%s3690_s3 + $0x8] sm:$0xff]  ;;  %v1063_v23 = vld [vmem:[%s3696_s9 + $0xf8] sm:$0xff] }
  0x13   : > { %2369 = vmatprep.subr.mxu1 %v532_v3  ;;  %v618_v19 = vld [vmem:[%s3691_s4] sm:$0xff]  ;;  %v526_v24 = vld [vmem:[%s3690_s3 + $0x10] sm:$0xff]  ;;  %v1061_v26 = vld [vmem:[%s3696_s9 + $0xe8] sm:$0xff] }
  0x14   : > { %2370 = vmatpush3.msra.mxu1 %v532_v3  ;;  %2405 = vmatprep.mubr.msk.f32.mxu0 %vm705_vm1, %v618_v19  ;;  %v1062_v25 = vld [vmem:[%s3696_s9 + $0xf0] sm:$0xff]  ;;  %v1060_v27 = vld [vmem:[%s3696_s9 + $0xe0] sm:$0xff]  ;;  %v527_v28 = vld [vmem:[%s3690_s3 + $0x18] sm:$0xff] }
  0x15   : > { %2371 = vmatprep.subr.mxu1 %v531_v4  ;;  %v1059_v29 = vld [vmem:[%s3696_s9 + $0xd8] sm:$0xff]  ;;  %v1058_v30 = vld [vmem:[%s3696_s9 + $0xd0] sm:$0xff]  ;;  %v1057_v31 = vld [vmem:[%s3696_s9 + $0xc8] sm:$0xff] }
  0x16   : > { %2372 = vmatpush3.msra.mxu1 %v531_v4  ;;  %v1056_v32 = vld [vmem:[%s3696_s9 + $0xc0] sm:$0xff]  ;;  %v1055_v33 = vld [vmem:[%s3696_s9 + $0xb8] sm:$0xff]  ;;  %v1054_v34 = vld [vmem:[%s3696_s9 + $0xb0] sm:$0xff] }
  0x17   : > { %2373 = vmatprep.subr.mxu1 %v530_v6  ;;  %v1053_v35 = vld [vmem:[%s3696_s9 + $0xa8] sm:$0xff]  ;;  %v1052_v36 = vld [vmem:[%s3696_s9 + $0xa0] sm:$0xff]  ;;  %v1051_v37 = vld [vmem:[%s3696_s9 + $0x98] sm:$0xff] }
  0x18   : > { %2374 = vmatpush3.msra.mxu1 %v530_v6  ;;  %v1050_v38 = vld [vmem:[%s3696_s9 + $0x90] sm:$0xff]  ;;  %v1049_v40 = vld [vmem:[%s3696_s9 + $0x88] sm:$0xff]  ;;  %v1048_v41 = vld [vmem:[%s3696_s9 + $0x80] sm:$0xff] }
  0x19   : > { %2375 = vmatprep.subr.mxu1 %v529_v7  ;;  %v619_v43 = vld [vmem:[%s3691_s4 + $0x8] sm:$0xff]  ;;  %v942_v44 = vld [vmem:[%s3695_s8 + $0xf8] sm:$0xff]  ;;  %v620_v45 = vld [vmem:[%s3691_s4 + $0x10] sm:$0xff] }
  0x1a   : > { %2376 = vmatpush3.msra.mxu1 %v529_v7  ;;  %v941_v46 = vld [vmem:[%s3695_s8 + $0xf0] sm:$0xff]  ;;  %v940_v47 = vld [vmem:[%s3695_s8 + $0xe8] sm:$0xff]  ;;  %v1047_v48 = vld [vmem:[%s3696_s9 + $0x78] sm:$0xff] }
  0x1b   : > { %2377 = vmatprep.subr.mxu1 %v528_v8  ;;  %v939_v49 = vld [vmem:[%s3695_s8 + $0xe0] sm:$0xff]  ;;  %v1046_v50 = vld [vmem:[%s3696_s9 + $0x70] sm:$0xff]  ;;  %v621_v51 = vld [vmem:[%s3691_s4 + $0x18] sm:$0xff] }
  0x1c   : > { %2378 = vmatpush3.msra.mxu1 %v528_v8  ;;  %v938_v52 = vld [vmem:[%s3695_s8 + $0xd8] sm:$0xff]  ;;  %v937_v53 = vld [vmem:[%s3695_s8 + $0xd0] sm:$0xff]  ;;  %v1045_v54 = vld [vmem:[%s3696_s9 + $0x68] sm:$0xff] }
  0x1d   : > { %2380 = vmatmul.mubr.msk.f32.vlgmr.msra.gmra.mxu1 %vm536_vm0, %v523_v9  ;;  %2382 = vmatprep.subr.mxu1 %v629_v10  ;;  %v936_v55 = vld [vmem:[%s3695_s8 + $0xc8] sm:$0xff]  ;;  %v1044_v56 = vld [vmem:[%s3696_s9 + $0x60] sm:$0xff]  ;;  %v1043_v58 = vld [vmem:[%s3696_s9 + $0x58] sm:$0xff] }
  0x1e   : > { %2383 = vmatpush3.msra.mxu1 %v629_v10  ;;  %2398 = vmatprep.mubr.msk.f32.mxu1 %vm536_vm0, %v522_v5  ;;  %v935_v57 = vld [vmem:[%s3695_s8 + $0xc0] sm:$0xff]  ;;  %v934_v59 = vld [vmem:[%s3695_s8 + $0xb8] sm:$0xff]  ;;  %v1042_v60 = vld [vmem:[%s3696_s9 + $0x50] sm:$0xff] }
  0x1f   : > { %2384 = vmatprep.subr.mxu1 %v628_v11  ;;  %v933_v61 = vld [vmem:[%s3695_s8 + $0xb0] sm:$0xff]  ;;  %v1041_v62 = vld [vmem:[%s3696_s9 + $0x48] sm:$0xff]  ;;  %v931_v0 = vld [vmem:[%s3695_s8 + $0xa0] sm:$0xff] }
  0x20   : > { %2385 = vmatpush3.msra.mxu1 %v628_v11  ;;  %v932_v63 = vld [vmem:[%s3695_s8 + $0xa8] sm:$0xff]  ;;  %v930_v1 = vld [vmem:[%s3695_s8 + $0x98] sm:$0xff]  ;;  %v929_v2 = vld [vmem:[%s3695_s8 + $0x90] sm:$0xff] }
  0x21   : > { %2386 = vmatprep.subr.mxu1 %v627_v12  ;;  %v928_v3 = vld [vmem:[%s3695_s8 + $0x88] sm:$0xff]  ;;  %v927_v4 = vld [vmem:[%s3695_s8 + $0x80] sm:$0xff]  ;;  %v926_v5 = vld [vmem:[%s3695_s8 + $0x78] sm:$0xff] }
  0x22   : > { %2387 = vmatpush3.msra.mxu1 %v627_v12  ;;  %v925_v6 = vld [vmem:[%s3695_s8 + $0x70] sm:$0xff]  ;;  %v924_v7 = vld [vmem:[%s3695_s8 + $0x68] sm:$0xff]  ;;  %v923_v8 = vld [vmem:[%s3695_s8 + $0x60] sm:$0xff] }
  0x23   : > { %2388 = vmatprep.subr.mxu1 %v626_v13  ;;  %v921_v10 = vld [vmem:[%s3695_s8 + $0x50] sm:$0xff]  ;;  %v920_v11 = vld [vmem:[%s3695_s8 + $0x48] sm:$0xff]  ;;  %v919_v12 = vld [vmem:[%s3695_s8 + $0x40] sm:$0xff] }
  0x24   : > { %2389 = vmatpush3.msra.mxu1 %v626_v13  ;;  %v918_v13 = vld [vmem:[%s3695_s8 + $0x38] sm:$0xff]  ;;  %v915_v19 = vld [vmem:[%s3695_s8 + $0x20] sm:$0xff] }
  0x25   : > { %2390 = vmatprep.subr.mxu1 %v625_v14 }
  0x26   : > { %2391 = vmatpush3.msra.mxu1 %v625_v14  ;;  %v1040_v14 = vld [vmem:[%s3696_s9 + $0x40] sm:$0xff] }
  0x27   : > { %2392 = vmatprep.subr.mxu1 %v624_v15 }
  0x28   : > { %2393 = vmatpush3.msra.mxu1 %v624_v15  ;;  %v917_v15 = vld [vmem:[%s3695_s8 + $0x30] sm:$0xff] }
  0x29   : > { %2394 = vmatprep.subr.mxu1 %v623_v16 }
  0x2a   : > { %2395 = vmatpush3.msra.mxu1 %v623_v16  ;;  %v1039_v16 = vld [vmem:[%s3696_s9 + $0x38] sm:$0xff] }
  0x2b   : > { %2396 = vmatprep.subr.mxu1 %v622_v17 }
  0x2c   : > { %2397 = vmatpush3.msra.mxu1 %v622_v17  ;;  %v916_v17 = vld [vmem:[%s3695_s8 + $0x28] sm:$0xff] }
  0x2d   : > { %2399 = vmatmul.mubr.msk.f32.vlgmr.msra.gmra.mxu1 %vm536_vm0, %v523_v9  ;;  %v922_v9 = vld [vmem:[%s3695_s8 + $0x58] sm:$0xff] }
  0x2e   : > { %2415 = vmatprep.mubr.msk.f32.mxu1 %vm705_vm1, %v524_v18  ;;  %v1038_v18 = vld [vmem:[%s3696_s9 + $0x30] sm:$0xff] }
  0xdd   : > { %v2381_v20 = vpop.f32.mrf.mxu1 }
  0xde   : > { %2411 = vmatprep.subr.mxu1 %v2381_v20 }
  0xdf   : > { %v609_v21 = vpop.f32.mrf.mxu1  ;;  %2412 = vmatpush3.msra.mxu1 %v2381_v20  ;;  %v1037_v20 = vld [vmem:[%s3696_s9 + $0x28] sm:$0xff] }
  0xe0   : > { %2413 = vmatprep.subr.mxu1 %v609_v21 }
  0xe1   : > { %2414 = vmatpush3.msra.mxu1 %v609_v21  ;;  %v914_v21 = vld [vmem:[%s3695_s8 + $0x18] sm:$0xff] }
  0xe2   : > { %2416 = vmatmul.mubr.msk.f32.vlgmr.msra.gmra.mxu1 %vm705_vm1, %v525_v22  ;;  %1064 = vmatprep.subr.mxu1 %v1063_v23  ;;  %v1036_v22 = vld [vmem:[%s3696_s9 + $0x20] sm:$0xff]  ;;  %v913_v23 = vld [vmem:[%s3695_s8 + $0x10] sm:$0xff] }
  0xe3   : > { %2418 = vmatprep.mubr.msk.f32.mxu1 %vm705_vm1, %v526_v24  ;;  %1065 = vmatpush1.msra.mxu1 %v1062_v25  ;;  %v1035_v24 = vld [vmem:[%s3696_s9 + $0x18] sm:$0xff]  ;;  %v912_v25 = vld [vmem:[%s3695_s8 + $0x8] sm:$0xff] }
  0xe4   : > { %1066 = vmatprep.subr.mxu1 %v1061_v26  ;;  %v1034_v26 = vld [vmem:[%s3696_s9 + $0x10] sm:$0xff] }
  0xe5   : > { %1067 = vmatpush1.msra.mxu1 %v1060_v27  ;;  %v911_v27 = vld [vmem:[%s3695_s8] sm:$0xff] }
  0xe6   : > { %2419 = vmatmul.mubr.msk.f32.gmra.mxu1 %vm705_vm1, %v527_v28  ;;  %1068 = vmatprep.subr.mxu1 %v1059_v29  ;;  %v1033_v28 = vld [vmem:[%s3696_s9 + $0x8] sm:$0xff]  ;;  %v1032_v29 = vld [vmem:[%s3696_s9] sm:$0xff] }
  0xe7   : > { %1069 = vmatpush1.msra.mxu1 %v1058_v30  ;;  %v1184_v30 = vld [vmem:[%s3697_s10 + $0xf8] sm:$0xff] }
  0xe8   : > { %1070 = vmatprep.subr.mxu1 %v1057_v31  ;;  %v2438_v31 = vmov 0.0  }
  0xe9   : > { %1071 = vmatpush1.msra.mxu1 %v1056_v32  ;;  %1128 = vmatprep.mubr.f32.mxu1 %v2438_v31 }
  0xea   : > { %1072 = vmatprep.subr.mxu1 %v1055_v33 }
  0xeb   : > { %1073 = vmatpush1.msra.mxu1 %v1054_v34 }
  0xec   : > { %1074 = vmatprep.subr.mxu1 %v1053_v35 }
  0xed   : > { %v2400_v39 = vpop.f32.mrf.mxu1  ;;  %1075 = vmatpush1.msra.mxu1 %v1052_v36 }
  0xee   : > { %2401 = vmatprep.subr.mxu0 %v2400_v39  ;;  %1076 = vmatprep.subr.mxu1 %v1051_v37 }
  0xef   : > { %v696_v42 = vpop.f32.mrf.mxu1  ;;  %2402 = vmatpush3.msra.mxu0 %v2400_v39  ;;  %1077 = vmatpush1.msra.mxu1 %v1050_v38  ;;  %v2310_v38 = vld [vmem:[%s3692_s5] ss:$0 sm:$0xff] }
  0xf0   : > { %2403 = vmatprep.subr.mxu0 %v696_v42  ;;  %1078 = vmatprep.subr.mxu1 %v1049_v40 }
  0xf1   : > { %2404 = vmatpush3.msra.mxu0 %v696_v42  ;;  %1079 = vmatpush1.msra.mxu1 %v1048_v41 }
  0xf2   : > { %2406 = vmatmul.mubr.msk.f32.vlgmr.msra.gmra.mxu0 %vm705_vm1, %v619_v43  ;;  %943 = vmatprep.subr.mxu0 %v942_v44  ;;  %v1183_v43 = vld [vmem:[%s3697_s10 + $0xf0] sm:$0xff]  ;;  %v1182_v44 = vld [vmem:[%s3697_s10 + $0xe8] sm:$0xff] }
  0xf3   : > { %2408 = vmatprep.mubr.msk.f32.mxu0 %vm705_vm1, %v620_v45  ;;  %944 = vmatpush1.msra.mxu0 %v941_v46  ;;  %v1181_v46 = vld [vmem:[%s3697_s10 + $0xe0] sm:$0xff] }
  0xf4   : > { %945 = vmatprep.subr.mxu0 %v940_v47  ;;  %1080 = vmatprep.subr.mxu1 %v1047_v48  ;;  %v1180_v48 = vld [vmem:[%s3697_s10 + $0xd8] sm:$0xff] }
  0xf5   : > { %946 = vmatpush1.msra.mxu0 %v939_v49  ;;  %1081 = vmatpush1.msra.mxu1 %v1046_v50  ;;  %v1179_v50 = vld [vmem:[%s3697_s10 + $0xd0] sm:$0xff] }
  0xf6   : > { %2409 = vmatmul.mubr.msk.f32.gmra.mxu0 %vm705_vm1, %v621_v51  ;;  %947 = vmatprep.subr.mxu0 %v938_v52  ;;  %v1178_v51 = vld [vmem:[%s3697_s10 + $0xc8] sm:$0xff] }
  0xf7   : > { %948 = vmatpush1.msra.mxu0 %v937_v53  ;;  %1082 = vmatprep.subr.mxu1 %v1045_v54  ;;  %v1177_v54 = vld [vmem:[%s3697_s10 + $0xc0] sm:$0xff] }
  0xf8   : > { %949 = vmatprep.subr.mxu0 %v936_v55  ;;  %1083 = vmatpush1.msra.mxu1 %v1044_v56  ;;  %v1176_v55 = vld [vmem:[%s3697_s10 + $0xb8] sm:$0xff]  ;;  %v1175_v56 = vld [vmem:[%s3697_s10 + $0xb0] sm:$0xff] }
  0xf9   : > { %950 = vmatpush1.msra.mxu0 %v935_v57  ;;  %1084 = vmatprep.subr.mxu1 %v1043_v58  ;;  %v1174_v57 = vld [vmem:[%s3697_s10 + $0xa8] sm:$0xff] }
  0xfa   : > { %951 = vmatprep.subr.mxu0 %v934_v59  ;;  %1085 = vmatpush1.msra.mxu1 %v1042_v60  ;;  %v1173_v59 = vld [vmem:[%s3697_s10 + $0xa0] sm:$0xff]  ;;  %v1172_v60 = vld [vmem:[%s3697_s10 + $0x98] sm:$0xff] }
  0xfb   : > { %952 = vmatpush1.msra.mxu0 %v933_v61  ;;  %1086 = vmatprep.subr.mxu1 %v1041_v62  ;;  %v1171_v61 = vld [vmem:[%s3697_s10 + $0x90] sm:$0xff]  ;;  %v1170_v62 = vld [vmem:[%s3697_s10 + $0x88] sm:$0xff] }
  0xfc   : > { %953 = vmatprep.subr.mxu0 %v932_v63  ;;  %1087 = vmatpush1.msra.mxu1 %v1040_v14  ;;  %v1169_v63 = vld [vmem:[%s3697_s10 + $0x80] sm:$0xff]  ;;  %v1154_v14 = vld [vmem:[%s3697_s10 + $0x8] sm:$0xff] }
  0xfd   : > { %954 = vmatpush1.msra.mxu0 %v931_v0  ;;  %1088 = vmatprep.subr.mxu1 %v1039_v16  ;;  %v1168_v0 = vld [vmem:[%s3697_s10 + $0x78] sm:$0xff] }
  0xfe   : > { %955 = vmatprep.subr.mxu0 %v930_v1  ;;  %1089 = vmatpush1.msra.mxu1 %v1038_v18  ;;  %v1167_v1 = vld [vmem:[%s3697_s10 + $0x70] sm:$0xff]  ;;  %v1568_v16 = vld [vmem:[%s3699_s12 + $0xf8] sm:$0xff]  ;;  %v1566_v18 = vld [vmem:[%s3699_s12 + $0xe8] sm:$0xff] }
  0xff   : > { %956 = vmatpush1.msra.mxu0 %v929_v2  ;;  %1090 = vmatprep.subr.mxu1 %v1037_v20  ;;  %v1166_v2 = vld [vmem:[%s3697_s10 + $0x68] sm:$0xff]  ;;  %v1564_v20 = vld [vmem:[%s3699_s12 + $0xd8] sm:$0xff] }
 0x100   : > { %957 = vmatprep.subr.mxu0 %v928_v3  ;;  %1091 = vmatpush1.msra.mxu1 %v1036_v22  ;;  %v1165_v3 = vld [vmem:[%s3697_s10 + $0x60] sm:$0xff]  ;;  %v1562_v22 = vld [vmem:[%s3699_s12 + $0xc8] sm:$0xff] }
 0x101   : > { %958 = vmatpush1.msra.mxu0 %v927_v4  ;;  %1092 = vmatprep.subr.mxu1 %v1035_v24  ;;  %v1164_v4 = vld [vmem:[%s3697_s10 + $0x58] sm:$0xff] }
 0x102   : > { %959 = vmatprep.subr.mxu0 %v926_v5  ;;  %1093 = vmatpush1.msra.mxu1 %v1034_v26  ;;  %v1163_v5 = vld [vmem:[%s3697_s10 + $0x50] sm:$0xff]  ;;  %v1560_v24 = vld [vmem:[%s3699_s12 + $0xb8] sm:$0xff]  ;;  %v1558_v26 = vld [vmem:[%s3699_s12 + $0xa8] sm:$0xff] }
 0x103   : > { %960 = vmatpush1.msra.mxu0 %v925_v6  ;;  %1094 = vmatprep.subr.mxu1 %v1033_v28  ;;  %v1162_v6 = vld [vmem:[%s3697_s10 + $0x48] sm:$0xff]  ;;  %v1556_v28 = vld [vmem:[%s3699_s12 + $0x98] sm:$0xff] }
 0x104   : > { %961 = vmatprep.subr.mxu0 %v924_v7  ;;  %1007 = vmatprep.mubr.f32.mxu0 %v2438_v31  ;;  %v1161_v7 = vld [vmem:[%s3697_s10 + $0x40] sm:$0xff] }
 0x105   : > { %962 = vmatpush1.msra.mxu0 %v923_v8  ;;  %1095 = vmatpush1.msra.mxu1 %v1032_v29  ;;  %v1160_v8 = vld [vmem:[%s3697_s10 + $0x38] sm:$0xff]  ;;  %v1555_v29 = vld [vmem:[%s3699_s12 + $0x90] sm:$0xff] }
 0x106   : > { %963 = vmatprep.subr.mxu0 %v922_v9  ;;  %v1159_v9 = vld [vmem:[%s3697_s10 + $0x30] sm:$0xff] }
 0x107   : > { %964 = vmatpush1.msra.mxu0 %v921_v10  ;;  %v1158_v10 = vld [vmem:[%s3697_s10 + $0x28] sm:$0xff] }
 0x108   : > { %965 = vmatprep.subr.mxu0 %v920_v11  ;;  %v1157_v11 = vld [vmem:[%s3697_s10 + $0x20] sm:$0xff] }
 0x109   : > { %966 = vmatpush1.msra.mxu0 %v919_v12  ;;  %v1156_v12 = vld [vmem:[%s3697_s10 + $0x18] sm:$0xff] }
 0x10a   : > { %967 = vmatprep.subr.mxu0 %v918_v13  ;;  %v1155_v13 = vld [vmem:[%s3697_s10 + $0x10] sm:$0xff] }
 0x10b   : > { %968 = vmatpush1.msra.mxu0 %v917_v15  ;;  %v1153_v15 = vld [vmem:[%s3697_s10] sm:$0xff] }
 0x10c   : > { %969 = vmatprep.subr.mxu0 %v916_v17  ;;  %v1567_v17 = vld [vmem:[%s3699_s12 + $0xf0] sm:$0xff] }
 0x10d   : > { %970 = vmatpush1.msra.mxu0 %v915_v19  ;;  %v1565_v19 = vld [vmem:[%s3699_s12 + $0xe0] sm:$0xff] }
 0x10e   : > { %971 = vmatprep.subr.mxu0 %v914_v21  ;;  %v1563_v21 = vld [vmem:[%s3699_s12 + $0xd0] sm:$0xff] }
 0x10f   : > { %972 = vmatpush1.msra.mxu0 %v913_v23  ;;  %v1561_v23 = vld [vmem:[%s3699_s12 + $0xc0] sm:$0xff] }
 0x110   : > { %973 = vmatprep.subr.mxu0 %v912_v25  ;;  %v1559_v25 = vld [vmem:[%s3699_s12 + $0xb0] sm:$0xff] }
 0x111   : > { %974 = vmatpush1.msra.mxu0 %v911_v27  ;;  %v1557_v27 = vld [vmem:[%s3699_s12 + $0xa0] sm:$0xff] }
 0x112   : > { %1185 = vmatprep.subr.mxu0 %v1184_v30  ;;  %v1554_v30 = vld [vmem:[%s3699_s12 + $0x88] sm:$0xff] }
 0x1a2   : > { %v2417_v32 = vpop.f32.mrf.mxu1 }
 0x1a4   : > { %v881_v33 = vpop.f32.mrf.mxu1 }
 0x1a6   : > { %v2420_v35 = vpop.f32.mrf.mxu1 }
 0x1a8   : > { %v891_v40 = vpop.f32.mrf.mxu1 }
 0x1b2   : > { %v2407_v34 = vpop.f32.mrf.mxu0 }
 0x1b3   : > { %v887_v41 = vadd.f32 %v2417_v32, %v2407_v34  ;;  %v1553_v32 = vld [vmem:[%s3699_s12 + $0x80] sm:$0xff]  ;;  %v1551_v34 = vld [vmem:[%s3699_s12 + $0x70] sm:$0xff] }
 0x1b4   : > { %v784_v36 = vpop.f32.mrf.mxu0 }
 0x1b5   : > { %v882_v37 = vadd.f32 %v881_v33, %v784_v36  ;;  %v2839_v49 = vadd.f32 %v2310_v38, %v887_v41  ;;  %v1552_v33 = vld [vmem:[%s3699_s12 + $0x78] sm:$0xff]  ;;  %v1549_v36 = vld [vmem:[%s3699_s12 + $0x60] sm:$0xff] }
 0x1b6   : > { %v2410_v39 = vpop.f32.mrf.mxu0 }
 0x1b7   : > { %v2822_v42 = vadd.f32 %v2310_v38, %v882_v37  ;;  %v897_v52 = vadd.f32 %v2420_v35, %v2410_v39  ;;  %v1550_v35 = vld [vmem:[%s3699_s12 + $0x68] sm:$0xff]  ;;  %v1548_v37 = vld [vmem:[%s3699_s12 + $0x58] sm:$0xff] }
 0x1b8   : > { %v794_v45 = vpop.f32.mrf.mxu0  ;;  %v1546_v39 = vld [vmem:[%s3699_s12 + $0x48] sm:$0xff] }
 0x1b9   : > { %1008 = vmatmul.mubr.f32.vlgmr.msra.gmra.mxu0 %v2822_v42  ;;  %1129 = vmatmul.mubr.f32.vlgmr.msra.gmra.mxu1 %v2822_v42  ;;  %v892_v47 = vadd.f32 %v891_v40, %v794_v45  ;;  %v910_v58 = vadd.f32 %v2310_v38, %v897_v52  ;;  %v3037_v52 = vld [vmem:[%s3693_s6 + $0x18] sm:$0xff] }
 0x1ba   : > { %1186 = vmatpush1.msra.mxu0 %v1183_v43  ;;  %1013 = vmatprep.mubr.f32.mxu0 %v2438_v31 }
 0x1bb   : > { %1187 = vmatprep.subr.mxu0 %v1182_v44  ;;  %1134 = vmatprep.mubr.f32.mxu1 %v2438_v31  ;;  %v2848_v53 = vadd.f32 %v2310_v38, %v892_v47  ;;  %v1547_v38 = vld [vmem:[%s3699_s12 + $0x50] sm:$0xff] }
 0x1bc   : > { %1188 = vmatpush1.msra.mxu0 %v1181_v46 }
 0x1bd   : > { %1189 = vmatprep.subr.mxu0 %v1180_v48  ;;  %1014 = vmatmul.mubr.f32.gmra.mxu0 %v2839_v49  ;;  %v3013_v48 = vld [vmem:[%s3693_s6] sm:$0xff] }
 0x1be   : > { %1135 = vmatmul.mubr.f32.gmra.mxu1 %v2839_v49  ;;  %1190 = vmatpush1.msra.mxu0 %v1179_v50  ;;  %v3029_v50 = vld [vmem:[%s3693_s6 + $0x10] sm:$0xff] }
 0x1bf   : > { %1191 = vmatprep.subr.mxu0 %v1178_v51  ;;  %1019 = vmatprep.mubr.f32.mxu0 %v2438_v31 }
 0x1c0   : > { %1192 = vmatpush1.msra.mxu0 %v1177_v54  ;;  %1140 = vmatprep.mubr.f32.mxu1 %v2438_v31 }
 0x1c1   : > { %1193 = vmatprep.subr.mxu0 %v1176_v55  ;;  %1020 = vmatmul.mubr.f32.gmra.mxu0 %v2848_v53 }
 0x1c2   : > { %1194 = vmatpush1.msra.mxu0 %v1175_v56  ;;  %1025 = vmatprep.mubr.f32.mxu0 %v2438_v31 }
 0x1c3   : > { %1195 = vmatprep.subr.mxu0 %v1174_v57  ;;  %1141 = vmatmul.mubr.f32.gmra.mxu1 %v2848_v53 }
 0x1c4   : > { %1196 = vmatpush1.msra.mxu0 %v1173_v59  ;;  %1146 = vmatprep.mubr.f32.mxu1 %v2438_v31 }
 0x1c5   : > { %1197 = vmatprep.subr.mxu0 %v1172_v60  ;;  %1026 = vmatmul.mubr.f32.gmra.mxu0 %v910_v58  ;;  %v3045_v60 = vld [vmem:[%s3694_s7] sm:$0xff] }
 0x1c6   : > { %1198 = vmatpush1.msra.mxu0 %v1171_v61  ;;  %1249 = vmatprep.mubr.f32.mxu0 %v2438_v31  ;;  %v1721_v61 = vld [vmem:[%s3700_s13 + $0xf8] sm:$0xff] }
 0x1c7   : > { %1199 = vmatprep.subr.mxu0 %v1170_v62  ;;  %1147 = vmatmul.mubr.f32.gmra.mxu1 %v910_v58  ;;  %v1720_v62 = vld [vmem:[%s3700_s13 + $0xf0] sm:$0xff] }
 0x1c8   : > { %1200 = vmatpush1.msra.mxu0 %v1169_v63  ;;  %1355 = vmatprep.mubr.f32.mxu1 %v2438_v31  ;;  %v1719_v63 = vld [vmem:[%s3700_s13 + $0xe8] sm:$0xff] }
 0x1c9   : > { %1201 = vmatprep.subr.mxu0 %v1168_v0  ;;  %v1718_v0 = vld [vmem:[%s3700_s13 + $0xe0] sm:$0xff] }
 0x1ca   : > { %1202 = vmatpush1.msra.mxu0 %v1167_v1  ;;  %v3065_v1 = vld [vmem:[%s3694_s7 + $0x8] sm:$0xff] }
 0x1cb   : > { %1203 = vmatprep.subr.mxu0 %v1166_v2  ;;  %v1717_v2 = vld [vmem:[%s3700_s13 + $0xd8] sm:$0xff] }
 0x1cc   : > { %1204 = vmatpush1.msra.mxu0 %v1165_v3  ;;  %v1716_v3 = vld [vmem:[%s3700_s13 + $0xd0] sm:$0xff] }
 0x1cd   : > { %1205 = vmatprep.subr.mxu0 %v1164_v4  ;;  %v1715_v4 = vld [vmem:[%s3700_s13 + $0xc8] sm:$0xff] }
 0x1ce   : > { %1206 = vmatpush1.msra.mxu0 %v1163_v5  ;;  %v1714_v5 = vld [vmem:[%s3700_s13 + $0xc0] sm:$0xff] }
 0x1cf   : > { %1207 = vmatprep.subr.mxu0 %v1162_v6  ;;  %v3085_v6 = vld [vmem:[%s3694_s7 + $0x10] sm:$0xff] }
 0x1d0   : > { %1208 = vmatpush1.msra.mxu0 %v1161_v7  ;;  %v1713_v7 = vld [vmem:[%s3700_s13 + $0xb8] sm:$0xff] }
 0x1d1   : > { %1209 = vmatprep.subr.mxu0 %v1160_v8  ;;  %v1712_v8 = vld [vmem:[%s3700_s13 + $0xb0] sm:$0xff] }
 0x1d2   : > { %1210 = vmatpush1.msra.mxu0 %v1159_v9  ;;  %v1711_v9 = vld [vmem:[%s3700_s13 + $0xa8] sm:$0xff] }
 0x1d3   : > { %1211 = vmatprep.subr.mxu0 %v1158_v10  ;;  %v1710_v10 = vld [vmem:[%s3700_s13 + $0xa0] sm:$0xff] }
 0x1d4   : > { %1212 = vmatpush1.msra.mxu0 %v1157_v11  ;;  %v3105_v11 = vld [vmem:[%s3694_s7 + $0x18] sm:$0xff] }
 0x1d5   : > { %1213 = vmatprep.subr.mxu0 %v1156_v12  ;;  %v1709_v12 = vld [vmem:[%s3700_s13 + $0x98] sm:$0xff] }
 0x1d6   : > { %1214 = vmatpush1.msra.mxu0 %v1155_v13  ;;  %v1708_v13 = vld [vmem:[%s3700_s13 + $0x90] sm:$0xff] }
 0x1d7   : > { %1215 = vmatprep.subr.mxu0 %v1154_v14  ;;  %v1707_v14 = vld [vmem:[%s3700_s13 + $0x88] sm:$0xff] }
 0x1d8   : > { %1216 = vmatpush1.msra.mxu0 %v1153_v15  ;;  %v1706_v15 = vld [vmem:[%s3700_s13 + $0x80] sm:$0xff] }
 0x1d9   : > { %1250 = vmatmul.mubr.f32.vlgmr.msra.gmra.mxu0 %v2822_v42  ;;  %1601 = vmatprep.subr.mxu0 %v1568_v16  ;;  %v1705_v16 = vld [vmem:[%s3700_s13 + $0x78] sm:$0xff] }
 0x1da   : > { %1255 = vmatprep.mubr.f32.mxu0 %v2438_v31  ;;  %1602 = vmatpush1.msra.mxu0 %v1567_v17  ;;  %v1704_v17 = vld [vmem:[%s3700_s13 + $0x70] sm:$0xff] }
 0x1db   : > { %1603 = vmatprep.subr.mxu0 %v1566_v18  ;;  %v1703_v18 = vld [vmem:[%s3700_s13 + $0x68] sm:$0xff] }
 0x1dc   : > { %1604 = vmatpush1.msra.mxu0 %v1565_v19  ;;  %v1702_v19 = vld [vmem:[%s3700_s13 + $0x60] sm:$0xff] }
 0x1dd   : > { %1256 = vmatmul.mubr.f32.gmra.mxu0 %v2839_v49  ;;  %1605 = vmatprep.subr.mxu0 %v1564_v20  ;;  %v3021_v49 = vld [vmem:[%s3693_s6 + $0x8] sm:$0xff]  ;;  %v1701_v20 = vld [vmem:[%s3700_s13 + $0x58] sm:$0xff] }
 0x1de   : > { %1261 = vmatprep.mubr.f32.mxu0 %v2438_v31  ;;  %1606 = vmatpush1.msra.mxu0 %v1563_v21  ;;  %v1700_v21 = vld [vmem:[%s3700_s13 + $0x50] sm:$0xff] }
 0x1df   : > { %1607 = vmatprep.subr.mxu0 %v1562_v22  ;;  %v1545_v22 = vld [vmem:[%s3699_s12 + $0x40] sm:$0xff] }
 0x1e0   : > { %1608 = vmatpush1.msra.mxu0 %v1561_v23  ;;  %v1699_v23 = vld [vmem:[%s3700_s13 + $0x48] sm:$0xff] }
 0x1e1   : > { %1262 = vmatmul.mubr.f32.gmra.mxu0 %v2848_v53  ;;  %1609 = vmatprep.subr.mxu0 %v1560_v24  ;;  %v1544_v24 = vld [vmem:[%s3699_s12 + $0x38] sm:$0xff] }
 0x1e2   : > { %1267 = vmatprep.mubr.f32.mxu0 %v2438_v31  ;;  %1610 = vmatpush1.msra.mxu0 %v1559_v25  ;;  %v1698_v25 = vld [vmem:[%s3700_s13 + $0x40] sm:$0xff] }
 0x1e3   : > { %1611 = vmatprep.subr.mxu0 %v1558_v26  ;;  %v1543_v26 = vld [vmem:[%s3699_s12 + $0x30] sm:$0xff] }
 0x1e4   : > { %1612 = vmatpush1.msra.mxu0 %v1557_v27  ;;  %v1697_v27 = vld [vmem:[%s3700_s13 + $0x38] sm:$0xff] }
 0x1e5   : > { %1268 = vmatmul.mubr.f32.gmra.mxu0 %v910_v58  ;;  %1613 = vmatprep.subr.mxu0 %v1556_v28  ;;  %v1542_v28 = vld [vmem:[%s3699_s12 + $0x28] sm:$0xff] }
 0x1e6   : > { %1614 = vmatpush1.msra.mxu0 %v1555_v29  ;;  %v1696_v29 = vld [vmem:[%s3700_s13 + $0x30] sm:$0xff] }
 0x1e7   : > { %1615 = vmatprep.subr.mxu0 %v1554_v30  ;;  %v1541_v30 = vld [vmem:[%s3699_s12 + $0x20] sm:$0xff] }
 0x1e8   : > { %1616 = vmatpush1.msra.mxu0 %v1553_v32  ;;  %v1695_v32 = vld [vmem:[%s3700_s13 + $0x28] sm:$0xff] }
 0x1e9   : > { %1617 = vmatprep.subr.mxu0 %v1552_v33  ;;  %v1540_v33 = vld [vmem:[%s3699_s12 + $0x18] sm:$0xff] }
 0x1ea   : > { %1618 = vmatpush1.msra.mxu0 %v1551_v34  ;;  %v1694_v34 = vld [vmem:[%s3700_s13 + $0x20] sm:$0xff] }
 0x1eb   : > { %1619 = vmatprep.subr.mxu0 %v1550_v35  ;;  %v1539_v35 = vld [vmem:[%s3699_s12 + $0x10] sm:$0xff] }
 0x1ec   : > { %1620 = vmatpush1.msra.mxu0 %v1549_v36  ;;  %v1693_v36 = vld [vmem:[%s3700_s13 + $0x18] sm:$0xff] }
 0x1ed   : > { %1621 = vmatprep.subr.mxu0 %v1548_v37  ;;  %v1538_v37 = vld [vmem:[%s3699_s12 + $0x8] sm:$0xff] }
 0x1ee   : > { %1622 = vmatpush1.msra.mxu0 %v1547_v38  ;;  %v1692_v38 = vld [vmem:[%s3700_s13 + $0x10] sm:$0xff] }
 0x1ef   : > { %1623 = vmatprep.subr.mxu0 %v1546_v39  ;;  %v1537_v39 = vld [vmem:[%s3699_s12] sm:$0xff] }
 0x1f0   : > { %1624 = vmatpush1.msra.mxu0 %v1545_v22  ;;  %v1736_v22 = vld [vmem:[%s3700_s13 + $0x170] sm:$0xff] }
 0x1f1   : > { %1625 = vmatprep.subr.mxu0 %v1544_v24  ;;  %v1735_v24 = vld [vmem:[%s3700_s13 + $0x168] sm:$0xff] }
 0x1f2   : > { %1626 = vmatpush1.msra.mxu0 %v1543_v26  ;;  %v1734_v26 = vld [vmem:[%s3700_s13 + $0x160] sm:$0xff] }
 0x1f3   : > { %1627 = vmatprep.subr.mxu0 %v1542_v28  ;;  %v1733_v28 = vld [vmem:[%s3700_s13 + $0x158] sm:$0xff] }
 0x1f4   : > { %1628 = vmatpush1.msra.mxu0 %v1541_v30  ;;  %v1732_v30 = vld [vmem:[%s3700_s13 + $0x150] sm:$0xff] }
 0x1f5   : > { %1629 = vmatprep.subr.mxu0 %v1540_v33  ;;  %v1731_v33 = vld [vmem:[%s3700_s13 + $0x148] sm:$0xff] }
 0x1f6   : > { %1630 = vmatpush1.msra.mxu0 %v1539_v35  ;;  %v1730_v35 = vld [vmem:[%s3700_s13 + $0x140] sm:$0xff] }
 0x1f7   : > { %1631 = vmatprep.subr.mxu0 %v1538_v37  ;;  %v1729_v37 = vld [vmem:[%s3700_s13 + $0x138] sm:$0xff] }
 0x1f8   : > { %1632 = vmatpush1.msra.mxu0 %v1537_v39  ;;  %v1728_v39 = vld [vmem:[%s3700_s13 + $0x130] sm:$0xff] }
 0x279   : > { %v1009_v40 = vpop.f32.mrf.mxu0 }
 0x27b   : > { %v1011_v41 = vpop.f32.mrf.mxu0 }
 0x27d   : > { %v1015_v42 = vpop.f32.mrf.mxu0 }
 0x27f   : > { %v1017_v43 = vpop.f32.mrf.mxu0 }
 0x281   : > { %v1021_v44 = vpop.f32.mrf.mxu0 }
 0x283   : > { %v1023_v45 = vpop.f32.mrf.mxu0 }
 0x285   : > { %v1027_v46 = vpop.f32.mrf.mxu0 }
 0x287   : > { %v1029_v47 = vpop.f32.mrf.mxu0 }
 0x288   : > { %1315 = vmatprep.subr.mxu1 %v1029_v47  ;;  %v1597_v47 = vld [vmem:[%s3699_s12 + $0x1e0] sm:$0xff] }
 0x289   : > { %1316 = vmatpush1.msra.mxu1 %v1027_v46  ;;  %v1752_v46 = vld [vmem:[%s3700_s13 + $0x1f0] sm:$0xff] }
 0x28a   : > { %1317 = vmatprep.subr.mxu1 %v1023_v45  ;;  %v1598_v45 = vld [vmem:[%s3699_s12 + $0x1e8] sm:$0xff] }
 0x28b   : > { %1318 = vmatpush1.msra.mxu1 %v1021_v44  ;;  %v1753_v44 = vld [vmem:[%s3700_s13 + $0x1f8] sm:$0xff] }
 0x28c   : > { %1319 = vmatprep.subr.mxu1 %v1017_v43  ;;  %v1599_v43 = vld [vmem:[%s3699_s12 + $0x1f0] sm:$0xff] }
 0x28d   : > { %1320 = vmatpush1.msra.mxu1 %v1015_v42  ;;  %v1690_v42 = vld [vmem:[%s3700_s13] sm:$0xff] }
 0x28e   : > { %1321 = vmatprep.subr.mxu1 %v1011_v41  ;;  %v1600_v41 = vld [vmem:[%s3699_s12 + $0x1f8] sm:$0xff] }
 0x28f   : > { %1322 = vmatpush1.msra.mxu1 %v1009_v40  ;;  %v1691_v40 = vld [vmem:[%s3700_s13 + $0x8] sm:$0xff]  ;;  %1633 = vmatprep.subr.mxu0 %v1600_v41 }
 0x290   : > { %2311 = vmatmul.mubr.msk.f32.vlgmr.msra.gmra.mxu1 %vm1278_vm2, %v3013_v48  ;;  %1634 = vmatpush2.msra.mxu0 %v1599_v43  ;;  %v1727_v41 = vld [vmem:[%s3700_s13 + $0x128] sm:$0xff]  ;;  %v1726_v43 = vld [vmem:[%s3700_s13 + $0x120] sm:$0xff] }
 0x291   : > { %1361 = vmatprep.mubr.f32.mxu1 %v2438_v31  ;;  %1635 = vmatprep.subr.mxu0 %v1598_v45  ;;  %v1725_v45 = vld [vmem:[%s3700_s13 + $0x118] sm:$0xff] }
 0x292   : > { %1636 = vmatpush2.msra.mxu0 %v1597_v47  ;;  %v1724_v47 = vld [vmem:[%s3700_s13 + $0x110] sm:$0xff] }
 0x294   : > { %2312 = vmatmul.mubr.msk.f32.gmra.mxu1 %vm1278_vm2, %v3021_v49 }
 0x295   : > { %1367 = vmatprep.mubr.f32.mxu1 %v2438_v31 }
 0x298   : > { %2313 = vmatmul.mubr.msk.f32.gmra.mxu1 %vm1278_vm2, %v3029_v50 }
 0x299   : > { %v1251_v51 = vpop.f32.mrf.mxu0  ;;  %1373 = vmatprep.mubr.f32.mxu1 %v2438_v31 }
 0x29b   : > { %v1253_v53 = vpop.f32.mrf.mxu0 }
 0x29c   : > { %2314 = vmatmul.mubr.msk.f32.gmra.mxu1 %vm1278_vm2, %v3037_v52 }
 0x29d   : > { %v1257_v54 = vpop.f32.mrf.mxu0  ;;  %1460 = vmatprep.mubr.f32.mxu1 %v2438_v31 }
 0x29f   : > { %v1259_v55 = vpop.f32.mrf.mxu0 }
 0x2a1   : > { %v1263_v56 = vpop.f32.mrf.mxu0 }
 0x2a3   : > { %v1265_v57 = vpop.f32.mrf.mxu0 }
 0x2a5   : > { %v1269_v58 = vpop.f32.mrf.mxu0 }
 0x2a7   : > { %v1271_v59 = vpop.f32.mrf.mxu0 }
 0x2a8   : > { %1420 = vmatprep.subr.mxu1 %v1271_v59  ;;  %v1593_v59 = vld [vmem:[%s3699_s12 + $0x1c0] sm:$0xff] }
 0x2a9   : > { %1421 = vmatpush1.msra.mxu1 %v1269_v58  ;;  %v1748_v58 = vld [vmem:[%s3700_s13 + $0x1d0] sm:$0xff] }
 0x2aa   : > { %1422 = vmatprep.subr.mxu1 %v1265_v57  ;;  %v1594_v57 = vld [vmem:[%s3699_s12 + $0x1c8] sm:$0xff] }
 0x2ab   : > { %1423 = vmatpush1.msra.mxu1 %v1263_v56  ;;  %v1749_v56 = vld [vmem:[%s3700_s13 + $0x1d8] sm:$0xff] }
 0x2ac   : > { %1424 = vmatprep.subr.mxu1 %v1259_v55  ;;  %v1595_v55 = vld [vmem:[%s3699_s12 + $0x1d0] sm:$0xff] }
 0x2ad   : > { %1425 = vmatpush1.msra.mxu1 %v1257_v54  ;;  %v1750_v54 = vld [vmem:[%s3700_s13 + $0x1e0] sm:$0xff] }
 0x2ae   : > { %1426 = vmatprep.subr.mxu1 %v1253_v53  ;;  %v1596_v53 = vld [vmem:[%s3699_s12 + $0x1d8] sm:$0xff] }
 0x2af   : > { %1427 = vmatpush1.msra.mxu1 %v1251_v51  ;;  %v1751_v51 = vld [vmem:[%s3700_s13 + $0x1e8] sm:$0xff]  ;;  %1637 = vmatprep.subr.mxu0 %v1596_v53 }
 0x2b0   : > { %2315 = vmatmul.mubr.msk.f32.vlgmr.msra.gmra.mxu1 %vm1278_vm2, %v3045_v60  ;;  %1754 = vmatprep.subr.mxu1 %v1721_v61  ;;  %v1747_v61 = vld [vmem:[%s3700_s13 + $0x1c8] sm:$0xff] }
 0x2b1   : > { %1466 = vmatprep.mubr.f32.mxu1 %v2438_v31  ;;  %1755 = vmatpush1.msra.mxu1 %v1720_v62  ;;  %v1592_v62 = vld [vmem:[%s3699_s12 + $0x1b8] sm:$0xff]  ;;  %v1723_v53 = vld [vmem:[%s3700_s13 + $0x108] sm:$0xff] }
 0x2b2   : > { %1756 = vmatprep.subr.mxu1 %v1719_v63  ;;  %1638 = vmatpush2.msra.mxu0 %v1595_v55  ;;  %v1746_v63 = vld [vmem:[%s3700_s13 + $0x1c0] sm:$0xff]  ;;  %v1874_v55 = vld [vmem:[%s3701_s14 + $0xf8] sm:$0xff] }
 0x2b3   : > { %1757 = vmatpush1.msra.mxu1 %v1718_v0  ;;  %1639 = vmatprep.subr.mxu0 %v1594_v57  ;;  %v1591_v0 = vld [vmem:[%s3699_s12 + $0x1b0] sm:$0xff] }
 0x2b4   : > { %2316 = vmatmul.mubr.msk.f32.gmra.mxu1 %vm1278_vm2, %v3065_v1  ;;  %1758 = vmatprep.subr.mxu1 %v1717_v2  ;;  %v1745_v2 = vld [vmem:[%s3700_s13 + $0x1b8] sm:$0xff] }
 0x2b5   : > { %1472 = vmatprep.mubr.f32.mxu1 %v2438_v31  ;;  %1759 = vmatpush1.msra.mxu1 %v1716_v3  ;;  %v1590_v3 = vld [vmem:[%s3699_s12 + $0x1a8] sm:$0xff] }
 0x2b6   : > { %1760 = vmatprep.subr.mxu1 %v1715_v4  ;;  %1640 = vmatpush2.msra.mxu0 %v1593_v59  ;;  %v1744_v4 = vld [vmem:[%s3700_s13 + $0x1b0] sm:$0xff] }
 0x2b7   : > { %1761 = vmatpush1.msra.mxu1 %v1714_v5  ;;  %1641 = vmatprep.subr.mxu0 %v1592_v62  ;;  %v1589_v5 = vld [vmem:[%s3699_s12 + $0x1a0] sm:$0xff] }
 0x2b8   : > { %2317 = vmatmul.mubr.msk.f32.gmra.mxu1 %vm1278_vm2, %v3085_v6  ;;  %1762 = vmatprep.subr.mxu1 %v1713_v7  ;;  %v1743_v7 = vld [vmem:[%s3700_s13 + $0x1a8] sm:$0xff] }
 0x2b9   : > { %1478 = vmatprep.mubr.f32.mxu1 %v2438_v31  ;;  %1763 = vmatpush1.msra.mxu1 %v1712_v8  ;;  %v1588_v8 = vld [vmem:[%s3699_s12 + $0x198] sm:$0xff] }
 0x2ba   : > { %1764 = vmatprep.subr.mxu1 %v1711_v9  ;;  %1642 = vmatpush2.msra.mxu0 %v1591_v0  ;;  %v1742_v9 = vld [vmem:[%s3700_s13 + $0x1a0] sm:$0xff] }
 0x2bb   : > { %1765 = vmatpush1.msra.mxu1 %v1710_v10  ;;  %1643 = vmatprep.subr.mxu0 %v1590_v3  ;;  %v1587_v10 = vld [vmem:[%s3699_s12 + $0x190] sm:$0xff] }
 0x2bc   : > { %2318 = vmatmul.mubr.msk.f32.gmra.mxu1 %vm1278_vm2, %v3105_v11  ;;  %1766 = vmatprep.subr.mxu1 %v1709_v12  ;;  %v1741_v12 = vld [vmem:[%s3700_s13 + $0x198] sm:$0xff] }
 0x2bd   : > { %1767 = vmatpush1.msra.mxu1 %v1708_v13  ;;  %1644 = vmatpush2.msra.mxu0 %v1589_v5  ;;  %v1586_v13 = vld [vmem:[%s3699_s12 + $0x188] sm:$0xff] }
 0x2be   : > { %1768 = vmatprep.subr.mxu1 %v1707_v14  ;;  %v1740_v14 = vld [vmem:[%s3700_s13 + $0x190] sm:$0xff]  ;;  %1645 = vmatprep.subr.mxu0 %v1588_v8  ;;  %v1495_v8 = vlaneseq }
 0x2bf   : > { %1769 = vmatpush1.msra.mxu1 %v1706_v15  ;;  %v1585_v15 = vld [vmem:[%s3699_s12 + $0x180] sm:$0xff]  ;;  %1646 = vmatpush2.msra.mxu0 %v1587_v10 }
 0x2c0   : > { %1770 = vmatprep.subr.mxu1 %v1705_v16  ;;  %v1739_v16 = vld [vmem:[%s3700_s13 + $0x188] sm:$0xff]  ;;  %1647 = vmatprep.subr.mxu0 %v1586_v13  ;;  %v3391_v10 = vshrl.u32 %v1495_v8, 7 }
 0x2c1   : > { %1771 = vmatpush1.msra.mxu1 %v1704_v17  ;;  %v1584_v17 = vld [vmem:[%s3699_s12 + $0x178] sm:$0xff]  ;;  %1648 = vmatpush2.msra.mxu0 %v1585_v15  ;;  %v1868_v8 = vld [vmem:[%s3701_s14 + $0xc8] sm:$0xff] }
 0x2c2   : > { %1772 = vmatprep.subr.mxu1 %v1703_v18  ;;  %v1738_v18 = vld [vmem:[%s3700_s13 + $0x180] sm:$0xff]  ;;  %1649 = vmatprep.subr.mxu0 %v1584_v17  ;;  %v1497_v13 = vsub.s32 0, %v3391_v10  ;;  %v1501_v15 = vsub.s32 1, %v3391_v10 }
 0x2c3   : > { %1773 = vmatpush1.msra.mxu1 %v1702_v19  ;;  %v1583_v19 = vld [vmem:[%s3699_s12 + $0x170] sm:$0xff] }
 0x2c4   : > { %1774 = vmatprep.subr.mxu1 %v1701_v20  ;;  %v1737_v20 = vld [vmem:[%s3700_s13 + $0x178] sm:$0xff]  ;;  %1650 = vmatpush2.msra.mxu0 %v1583_v19 }
 0x2c5   : > { %1775 = vmatpush1.msra.mxu1 %v1700_v21  ;;  %v1582_v21 = vld [vmem:[%s3699_s12 + $0x168] sm:$0xff] }
 0x2c6   : > { %1776 = vmatprep.subr.mxu1 %v1699_v23  ;;  %v1581_v23 = vld [vmem:[%s3699_s12 + $0x160] sm:$0xff]  ;;  %1651 = vmatprep.subr.mxu0 %v1582_v21 }
 0x2c7   : > { %1777 = vmatpush1.msra.mxu1 %v1698_v25  ;;  %v1580_v25 = vld [vmem:[%s3699_s12 + $0x158] sm:$0xff]  ;;  %1652 = vmatpush2.msra.mxu0 %v1581_v23 }
 0x2c8   : > { %1778 = vmatprep.subr.mxu1 %v1697_v27  ;;  %v1579_v27 = vld [vmem:[%s3699_s12 + $0x150] sm:$0xff]  ;;  %1653 = vmatprep.subr.mxu0 %v1580_v25 }
 0x2c9   : > { %1779 = vmatpush1.msra.mxu1 %v1696_v29  ;;  %1654 = vmatpush2.msra.mxu0 %v1579_v27  ;;  %v1578_v29 = vld [vmem:[%s3699_s12 + $0x148] sm:$0xff] }
 0x2ca   : > { %1780 = vmatprep.subr.mxu1 %v1695_v32  ;;  %1655 = vmatprep.subr.mxu0 %v1578_v29  ;;  %v1577_v32 = vld [vmem:[%s3699_s12 + $0x140] sm:$0xff] }
 0x2cb   : > { %1781 = vmatpush1.msra.mxu1 %v1694_v34  ;;  %1656 = vmatpush2.msra.mxu0 %v1577_v32  ;;  %v1576_v34 = vld [vmem:[%s3699_s12 + $0x138] sm:$0xff] }
 0x2cc   : > { %1782 = vmatprep.subr.mxu1 %v1693_v36  ;;  %1657 = vmatprep.subr.mxu0 %v1576_v34  ;;  %v1575_v36 = vld [vmem:[%s3699_s12 + $0x130] sm:$0xff] }
 0x2cd   : > { %1783 = vmatpush1.msra.mxu1 %v1692_v38  ;;  %1658 = vmatpush2.msra.mxu0 %v1575_v36  ;;  %v1574_v38 = vld [vmem:[%s3699_s12 + $0x128] sm:$0xff] }
 0x2ce   : > { %1784 = vmatprep.subr.mxu1 %v1691_v40  ;;  %1659 = vmatprep.subr.mxu0 %v1574_v38  ;;  %v1573_v40 = vld [vmem:[%s3699_s12 + $0x120] sm:$0xff] }
 0x2cf   : > { %1785 = vmatpush1.msra.mxu1 %v1690_v42  ;;  %1660 = vmatpush2.msra.mxu0 %v1573_v40  ;;  %v1572_v42 = vld [vmem:[%s3699_s12 + $0x118] sm:$0xff] }
 0x2d0   : > { %1786 = vmatprep.subr.mxu1 %v1753_v44  ;;  %1661 = vmatprep.subr.mxu0 %v1572_v42  ;;  %v1571_v44 = vld [vmem:[%s3699_s12 + $0x110] sm:$0xff] }
 0x2d1   : > { %1787 = vmatpush2.msra.mxu1 %v1752_v46  ;;  %1662 = vmatpush2.msra.mxu0 %v1571_v44  ;;  %v1570_v46 = vld [vmem:[%s3699_s12 + $0x108] sm:$0xff] }
 0x2d2   : > { %1788 = vmatprep.subr.mxu1 %v1751_v51  ;;  %1663 = vmatprep.subr.mxu0 %v1570_v46  ;;  %v1569_v51 = vld [vmem:[%s3699_s12 + $0x100] sm:$0xff] }
 0x2d3   : > { %1789 = vmatpush2.msra.mxu1 %v1750_v54  ;;  %1664 = vmatpush2.msra.mxu0 %v1569_v51  ;;  %v1722_v54 = vld [vmem:[%s3700_s13 + $0x100] sm:$0xff] }
 0x2d4   : > { %1790 = vmatprep.subr.mxu1 %v1749_v56  ;;  %1907 = vmatprep.subr.mxu0 %v1874_v55  ;;  %v1130_v56 = vpop.f32.mrf.mxu1  ;;  %v1871_v55 = vld [vmem:[%s3701_s14 + $0xe0] sm:$0xff] }
 0x2d5   : > { %1791 = vmatpush2.msra.mxu1 %v1748_v58 }
 0x2d6   : > { %1792 = vmatprep.subr.mxu1 %v1747_v61  ;;  %v1132_v57 = vpop.f32.mrf.mxu1 }
 0x2d7   : > { %1793 = vmatpush2.msra.mxu1 %v1746_v63 }
 0x2d8   : > { %1794 = vmatprep.subr.mxu1 %v1745_v2  ;;  %v1136_v58 = vpop.f32.mrf.mxu1 }
 0x2d9   : > { %1795 = vmatpush2.msra.mxu1 %v1744_v4 }
 0x2da   : > { %1796 = vmatprep.subr.mxu1 %v1743_v7  ;;  %v1138_v59 = vpop.f32.mrf.mxu1 }
 0x2db   : > { %1797 = vmatpush2.msra.mxu1 %v1742_v9 }
 0x2dc   : > { %1798 = vmatprep.subr.mxu1 %v1741_v12  ;;  %v1142_v61 = vpop.f32.mrf.mxu1 }
 0x2dd   : > { %1799 = vmatpush2.msra.mxu1 %v1740_v14  ;;  %v1493_v14 = vld [vmem:[%s3698_s11] sm:$0x3] }
 0x2de   : > { %1800 = vmatprep.subr.mxu1 %v1739_v16  ;;  %v1144_v62 = vpop.f32.mrf.mxu1 }
 0x2df   : > { %1801 = vmatpush2.msra.mxu1 %v1738_v18  ;;  %v1498_v18 = vrot.slane %v1493_v14, %v1497_v13 }
 0x2e0   : > { %1802 = vmatprep.subr.mxu1 %v1737_v20  ;;  %v1148_v63 = vpop.f32.mrf.mxu1 }
 0x2e1   : > { %1803 = vmatpush2.msra.mxu1 %v1736_v22  ;;  %v3402_v22 = vrot.slane %v1493_v14, %v1501_v15 }
 0x2e2   : > { %1804 = vmatprep.subr.mxu1 %v1735_v24  ;;  %v1150_v0 = vpop.f32.mrf.mxu1 }
 0x2e3   : > { %1805 = vmatpush2.msra.mxu1 %v1734_v26 }
 0x2e4   : > { %1806 = vmatprep.subr.mxu1 %v1733_v28 }
 0x2e5   : > { %1807 = vmatpush2.msra.mxu1 %v1732_v30 }
 0x2e6   : > { %1808 = vmatprep.subr.mxu1 %v1731_v33 }
 0x2e7   : > { %1809 = vmatpush2.msra.mxu1 %v1730_v35 }
 0x2e8   : > { %1810 = vmatprep.subr.mxu1 %v1729_v37 }
 0x2e9   : > { %1811 = vmatpush2.msra.mxu1 %v1728_v39 }
 0x2ea   : > { %1812 = vmatprep.subr.mxu1 %v1727_v41 }
 0x2eb   : > { %1813 = vmatpush2.msra.mxu1 %v1726_v43  ;;  %v1873_v43 = vld [vmem:[%s3701_s14 + $0xf0] sm:$0xff] }
 0x2ec   : > { %1814 = vmatprep.subr.mxu1 %v1725_v45 }
 0x2ed   : > { %1815 = vmatpush2.msra.mxu1 %v1724_v47  ;;  %v1872_v47 = vld [vmem:[%s3701_s14 + $0xe8] sm:$0xff] }
 0x2ee   : > { %1816 = vmatprep.subr.mxu1 %v1723_v53 }
 0x2ef   : > { %1817 = vmatpush2.msra.mxu1 %v1722_v54 }
 0x350   : > { %v1357_v2 = vpop.f32.mrf.mxu1 }
 0x351   : > { %v1358_v17 = vadd.f32 %v1357_v2, %v1130_v56 }
 0x352   : > { %v1359_v3 = vpop.f32.mrf.mxu1 }
 0x353   : > { %v1360_v20 = vadd.f32 %v1359_v3, %v1132_v57 }
 0x354   : > { %v1363_v4 = vpop.f32.mrf.mxu1 }
 0x355   : > { %v1364_v24 = vadd.f32 %v1363_v4, %v1136_v58  ;;  %v1870_v58 = vld [vmem:[%s3701_s14 + $0xd8] sm:$0xff]  ;;  %v1869_v4 = vld [vmem:[%s3701_s14 + $0xd0] sm:$0xff] }
 0x356   : > { %v1365_v5 = vpop.f32.mrf.mxu1 }
 0x357   : > { %v1366_v28 = vadd.f32 %v1365_v5, %v1138_v59 }
 0x358   : > { %v1369_v7 = vpop.f32.mrf.mxu1 }
 0x359   : > { %v1370_v32 = vadd.f32 %v1369_v7, %v1142_v61 }
 0x35a   : > { %v1371_v9 = vpop.f32.mrf.mxu1 }
 0x35b   : > { %v1372_v39 = vadd.f32 %v1371_v9, %v1144_v62 }
 0x35c   : > { %v1375_v12 = vpop.f32.mrf.mxu1 }
 0x35d   : > { %v1376_v44 = vadd.f32 %v1375_v12, %v1148_v63  ;;  %v1867_v12 = vld [vmem:[%s3701_s14 + $0xc0] sm:$0xff] }
 0x35e   : > { %v1377_v16 = vpop.f32.mrf.mxu1 }
 0x35f   : > { %v1378_v59 = vadd.f32 %v1377_v16, %v1150_v0 }
 0x370   : > { %v1462_v19 = vpop.f32.mrf.mxu1 }
 0x371   : > { %v1485_v21 = vadd.f32 %v1462_v19, %v1358_v17  ;;  %v1866_v17 = vld [vmem:[%s3701_s14 + $0xb8] sm:$0xff] }
 0x372   : > { %v1464_v23 = vpop.f32.mrf.mxu1 }
 0x373   : > { %v1505_v25 = vadd.f32 %v1498_v18, %v1485_v21  ;;  %v1486_v26 = vadd.f32 %v1464_v23, %v1360_v20  ;;  %v1864_v20 = vld [vmem:[%s3701_s14 + $0xa8] sm:$0xff]  ;;  %v1863_v23 = vld [vmem:[%s3701_s14 + $0xa0] sm:$0xff] }
 0x374   : > { %v1468_v27 = vpop.f32.mrf.mxu1 }
 0x375   : > { %v1506_v29 = vadd.f32 %v3402_v22, %v1486_v26  ;;  %v1487_v30 = vadd.f32 %v1468_v27, %v1364_v24  ;;  %vm1513_vm3 = vcmp.ge.f32.partialorder %v1505_v25, 0.0  ;;  %v1521_v33 = vmul.f32 0.1, %v1505_v25  ;;  %v1861_v26 = vld [vmem:[%s3701_s14 + $0x90] sm:$0xff] }
 0x376   : > { %v1470_v34 = vpop.f32.mrf.mxu1 }
 0x377   : > { %v1507_v35 = vadd.f32 %v1498_v18, %v1487_v30  ;;  %v1488_v36 = vadd.f32 %v1470_v34, %v1366_v28  ;;  %vm1514_vm4 = vcmp.ge.f32.partialorder %v1506_v29, 0.0  ;;  %v1522_v37 = vmul.f32 0.1, %v1506_v29  ;;  %v1860_v28 = vld [vmem:[%s3701_s14 + $0x88] sm:$0xff]  ;;  %v1858_v30 = vld [vmem:[%s3701_s14 + $0x78] sm:$0xff]  ;;  %v1855_v34 = vld [vmem:[%s3701_s14 + $0x60] sm:$0xff] }
 0x378   : > { %v1474_v38 = vpop.f32.mrf.mxu1  ;;  %v3414_v46 = vsel %vm1513_vm3, %v1505_v25, %v1521_v33  ;;  %v1862_v25 = vld [vmem:[%s3701_s14 + $0x98] sm:$0xff]  ;;  %v1856_v33 = vld [vmem:[%s3701_s14 + $0x68] sm:$0xff] }
 0x379   : > { %v1508_v40 = vadd.f32 %v3402_v22, %v1488_v36  ;;  %v1489_v41 = vadd.f32 %v1474_v38, %v1370_v32  ;;  %v3406_v42 = vsel %vm1514_vm4, %v1506_v29, %v1522_v37  ;;  %vm1515_vm5 = vcmp.ge.f32.partialorder %v1507_v35, 0.0  ;;  %v1859_v29 = vld [vmem:[%s3701_s14 + $0x80] sm:$0xff]  ;;  %v1857_v32 = vld [vmem:[%s3701_s14 + $0x70] sm:$0xff]  ;;  %v1852_v37 = vld [vmem:[%s3701_s14 + $0x48] sm:$0xff] }
 0x37a   : > { %v1476_v45 = vpop.f32.mrf.mxu1  ;;  %1665 = vmatprep.mubr.f32.mxu0 %v3406_v42  ;;  %1818 = vmatprep.mubr.f32.mxu1 %v3406_v42  ;;  %v1523_v51 = vmul.f32 0.1, %v1507_v35  ;;  %v1853_v36 = vld [vmem:[%s3701_s14 + $0x50] sm:$0xff]  ;;  %v1851_v38 = vld [vmem:[%s3701_s14 + $0x40] sm:$0xff] }
 0x37b   : > { %v1509_v53 = vadd.f32 %v1498_v18, %v1489_v41  ;;  %v1490_v54 = vadd.f32 %v1476_v45, %v1372_v39  ;;  %1666 = vmatmul.mubr.f32.vlgmr.msra.gmra.mxu0 %v3414_v46  ;;  %1819 = vmatmul.mubr.f32.vlgmr.msra.gmra.mxu1 %v3414_v46  ;;  %vm1516_vm6 = vcmp.ge.f32.partialorder %v1508_v40, 0.0  ;;  %v1524_v56 = vmul.f32 0.1, %v1508_v40  ;;  %v1850_v39 = vld [vmem:[%s3701_s14 + $0x38] sm:$0xff]  ;;  %v1848_v41 = vld [vmem:[%s3701_s14 + $0x28] sm:$0xff] }
 0x37c   : > { %1908 = vmatpush1.msra.mxu0 %v1873_v43  ;;  %v1480_v57 = vpop.f32.mrf.mxu1  ;;  %v3432_v3 = vsel %vm1515_vm5, %v1507_v35, %v1523_v51  ;;  %v1854_v35 = vld [vmem:[%s3701_s14 + $0x58] sm:$0xff]  ;;  %v1844_v45 = vld [vmem:[%s3701_s14 + $0x8] sm:$0xff] }
 0x37d   : > { %v1510_v61 = vadd.f32 %v3402_v22, %v1490_v54  ;;  %v1491_v62 = vadd.f32 %v1480_v57, %v1376_v44  ;;  %1909 = vmatprep.subr.mxu0 %v1872_v47  ;;  %v3428_v63 = vsel %vm1516_vm6, %v1508_v40, %v1524_v56  ;;  %v1525_v5 = vmul.f32 0.1, %v1509_v53  ;;  %v1849_v40 = vld [vmem:[%s3701_s14 + $0x30] sm:$0xff]  ;;  %v1846_v43 = vld [vmem:[%s3701_s14 + $0x18] sm:$0xff]  ;;  %v1843_v47 = vld [vmem:[%s3701_s14] sm:$0xff] }
 0x37e   : > { %1910 = vmatpush1.msra.mxu0 %v1871_v55  ;;  %v1482_v2 = vpop.f32.mrf.mxu1  ;;  %1671 = vmatprep.mubr.f32.mxu0 %v3428_v63  ;;  %vm1517_vm8 = vcmp.ge.f32.partialorder %v1509_v53, 0.0  ;;  %v1845_v44 = vld [vmem:[%s3701_s14 + $0x10] sm:$0xff]  ;;  %v1906_v51 = vld [vmem:[%s3701_s14 + $0x1f8] sm:$0xff]  ;;  %v1904_v54 = vld [vmem:[%s3701_s14 + $0x1e8] sm:$0xff] }
 0x37f   : > { %v1511_v7 = vadd.f32 %v1498_v18, %v1491_v62  ;;  %v1492_v0 = vadd.f32 %v1482_v2, %v1378_v59  ;;  %1824 = vmatprep.mubr.f32.mxu1 %v3428_v63  ;;  %1911 = vmatprep.subr.mxu0 %v1870_v58  ;;  %vm1518_vm7 = vcmp.ge.f32.partialorder %v1510_v61, 0.0  ;;  %v1526_v9 = vmul.f32 0.1, %v1510_v61  ;;  %v1865_v18 = vld [vmem:[%s3701_s14 + $0xb0] sm:$0xff]  ;;  %v1903_v55 = vld [vmem:[%s3701_s14 + $0x1e0] sm:$0xff]  ;;  %v1902_v56 = vld [vmem:[%s3701_s14 + $0x1d8] sm:$0xff] }
 0x380   : > { %1672 = vmatmul.mubr.f32.gmra.mxu0 %v3432_v3  ;;  %1825 = vmatmul.mubr.f32.gmra.mxu1 %v3432_v3  ;;  %v3457_v19 = vsel %vm1517_vm8, %v1509_v53, %v1525_v5  ;;  %v1905_v53 = vld [vmem:[%s3701_s14 + $0x1f0] sm:$0xff]  ;;  %v1900_v58 = vld [vmem:[%s3701_s14 + $0x1c8] sm:$0xff]  ;;  %v1899_v59 = vld [vmem:[%s3701_s14 + $0x1c0] sm:$0xff] }
 0x381   : > { %v1512_v14 = vadd.f32 %v3402_v22, %v1492_v0  ;;  %1912 = vmatpush1.msra.mxu0 %v1869_v4  ;;  %v3447_v16 = vsel %vm1518_vm7, %v1510_v61, %v1526_v9  ;;  %v1527_v22 = vmul.f32 0.1, %v1511_v7  ;;  %vm1519_vm10 = vcmp.ge.f32.partialorder %v1511_v7, 0.0  ;;  %v1901_v57 = vld [vmem:[%s3701_s14 + $0x1d0] sm:$0xff]  ;;  %v1898_v61 = vld [vmem:[%s3701_s14 + $0x1b8] sm:$0xff]  ;;  %v1896_v2 = vld [vmem:[%s3701_s14 + $0x1a8] sm:$0xff] }
 0x382   : > { %1913 = vmatprep.subr.mxu0 %v1868_v8  ;;  %1677 = vmatprep.mubr.f32.mxu0 %v3447_v16  ;;  %v1897_v62 = vld [vmem:[%s3701_s14 + $0x1b0] sm:$0xff]  ;;  %v1895_v4 = vld [vmem:[%s3701_s14 + $0x1a0] sm:$0xff]  ;;  %v1894_v5 = vld [vmem:[%s3701_s14 + $0x198] sm:$0xff] }
 0x383   : > { %1914 = vmatpush1.msra.mxu0 %v1867_v12  ;;  %1830 = vmatprep.mubr.f32.mxu1 %v3447_v16  ;;  %vm1520_vm9 = vcmp.ge.f32.partialorder %v1512_v14, 0.0  ;;  %v1528_v21 = vmul.f32 0.1, %v1512_v14  ;;  %v3477_v27 = vsel %vm1519_vm10, %v1511_v7, %v1527_v22  ;;  %v1893_v7 = vld [vmem:[%s3701_s14 + $0x190] sm:$0xff]  ;;  %v1892_v0 = vld [vmem:[%s3701_s14 + $0x188] sm:$0xff]  ;;  %v1891_v8 = vld [vmem:[%s3701_s14 + $0x180] sm:$0xff] }
 0x384   : > { %1915 = vmatprep.subr.mxu0 %v1866_v17  ;;  %1678 = vmatmul.mubr.f32.gmra.mxu0 %v3457_v19  ;;  %v1890_v9 = vld [vmem:[%s3701_s14 + $0x178] sm:$0xff]  ;;  %v1889_v12 = vld [vmem:[%s3701_s14 + $0x170] sm:$0xff]  ;;  %v1887_v17 = vld [vmem:[%s3701_s14 + $0x160] sm:$0xff] }
 0x385   : > { %1831 = vmatmul.mubr.f32.gmra.mxu1 %v3457_v19  ;;  %1916 = vmatpush1.msra.mxu0 %v1865_v18  ;;  %v3467_v24 = vsel %vm1520_vm9, %v1512_v14, %v1528_v21  ;;  %v1888_v14 = vld [vmem:[%s3701_s14 + $0x168] sm:$0xff]  ;;  %v1886_v18 = vld [vmem:[%s3701_s14 + $0x158] sm:$0xff]  ;;  %v1883_v22 = vld [vmem:[%s3701_s14 + $0x140] sm:$0xff] }
 0x386   : > { %1917 = vmatprep.subr.mxu0 %v1864_v20  ;;  %1683 = vmatprep.mubr.f32.mxu0 %v3467_v24  ;;  %v1885_v20 = vld [vmem:[%s3701_s14 + $0x150] sm:$0xff]  ;;  %v1884_v21 = vld [vmem:[%s3701_s14 + $0x148] sm:$0xff] }
 0x387   : > { %1918 = vmatpush1.msra.mxu0 %v1863_v23  ;;  %1836 = vmatprep.mubr.f32.mxu1 %v3467_v24  ;;  %v1882_v23 = vld [vmem:[%s3701_s14 + $0x138] sm:$0xff] }
 0x388   : > { %1919 = vmatprep.subr.mxu0 %v1862_v25  ;;  %1684 = vmatmul.mubr.f32.gmra.mxu0 %v3477_v27  ;;  %v1881_v25 = vld [vmem:[%s3701_s14 + $0x130] sm:$0xff] }
 0x389   : > { %1837 = vmatmul.mubr.f32.gmra.mxu1 %v3477_v27  ;;  %1920 = vmatpush1.msra.mxu0 %v1861_v26  ;;  %v1880_v26 = vld [vmem:[%s3701_s14 + $0x128] sm:$0xff] }
 0x38a   : > { %1921 = vmatprep.subr.mxu0 %v1860_v28  ;;  %1971 = vmatprep.mubr.f32.mxu0 %v3406_v42  ;;  %v1847_v42 = vld [vmem:[%s3701_s14 + $0x20] sm:$0xff] }
 0x38b   : > { %1922 = vmatpush1.msra.mxu0 %v1859_v29  ;;  %2060 = vmatprep.mubr.f32.mxu1 %v2438_v31  ;;  %v1879_v28 = vld [vmem:[%s3701_s14 + $0x120] sm:$0xff]  ;;  %v1878_v29 = vld [vmem:[%s3701_s14 + $0x118] sm:$0xff] }
 0x38c   : > { %1923 = vmatprep.subr.mxu0 %v1858_v30  ;;  %v1877_v30 = vld [vmem:[%s3701_s14 + $0x110] sm:$0xff] }
 0x38d   : > { %1924 = vmatpush1.msra.mxu0 %v1857_v32  ;;  %v1876_v32 = vld [vmem:[%s3701_s14 + $0x108] sm:$0xff] }
 0x38e   : > { %1925 = vmatprep.subr.mxu0 %v1856_v33  ;;  %v1875_v33 = vld [vmem:[%s3701_s14 + $0x100] sm:$0xff] }
 0x38f   : > { %1926 = vmatpush1.msra.mxu0 %v1855_v34 }
 0x390   : > { %1927 = vmatprep.subr.mxu0 %v1854_v35 }
 0x391   : > { %1928 = vmatpush1.msra.mxu0 %v1853_v36 }
 0x392   : > { %1929 = vmatprep.subr.mxu0 %v1852_v37 }
 0x393   : > { %1930 = vmatpush1.msra.mxu0 %v1851_v38 }
 0x394   : > { %1931 = vmatprep.subr.mxu0 %v1850_v39 }
 0x395   : > { %1932 = vmatpush1.msra.mxu0 %v1849_v40 }
 0x396   : > { %1933 = vmatprep.subr.mxu0 %v1848_v41 }
 0x397   : > { %1934 = vmatpush1.msra.mxu0 %v1847_v42 }
 0x398   : > { %1935 = vmatprep.subr.mxu0 %v1846_v43 }
 0x399   : > { %1936 = vmatpush1.msra.mxu0 %v1845_v44 }
 0x39a   : > { %1937 = vmatprep.subr.mxu0 %v1844_v45 }
 0x39b   : > { %1938 = vmatpush1.msra.mxu0 %v1843_v47 }
 0x39c   : > { %1939 = vmatprep.subr.mxu0 %v1906_v51 }
 0x39d   : > { %1940 = vmatpush2.msra.mxu0 %v1905_v53 }
 0x39e   : > { %1941 = vmatprep.subr.mxu0 %v1904_v54 }
 0x39f   : > { %1942 = vmatpush2.msra.mxu0 %v1903_v55 }
 0x3a0   : > { %1943 = vmatprep.subr.mxu0 %v1902_v56 }
 0x3a1   : > { %1944 = vmatpush2.msra.mxu0 %v1901_v57 }
 0x3a2   : > { %1945 = vmatprep.subr.mxu0 %v1900_v58 }
 0x3a3   : > { %1946 = vmatpush2.msra.mxu0 %v1899_v59 }
 0x3a4   : > { %1947 = vmatprep.subr.mxu0 %v1898_v61 }
 0x3a5   : > { %1948 = vmatpush2.msra.mxu0 %v1897_v62 }
 0x3a6   : > { %1949 = vmatprep.subr.mxu0 %v1896_v2 }
 0x3a7   : > { %1950 = vmatpush2.msra.mxu0 %v1895_v4 }
 0x3a8   : > { %1951 = vmatprep.subr.mxu0 %v1894_v5 }
 0x3a9   : > { %1952 = vmatpush2.msra.mxu0 %v1893_v7 }
 0x3aa   : > { %1953 = vmatprep.subr.mxu0 %v1892_v0 }
 0x3ab   : > { %1954 = vmatpush2.msra.mxu0 %v1891_v8 }
 0x3ac   : > { %1955 = vmatprep.subr.mxu0 %v1890_v9 }
 0x3ad   : > { %1956 = vmatpush2.msra.mxu0 %v1889_v12 }
 0x3ae   : > { %1957 = vmatprep.subr.mxu0 %v1888_v14 }
 0x3af   : > { %1958 = vmatpush2.msra.mxu0 %v1887_v17 }
 0x3b0   : > { %1959 = vmatprep.subr.mxu0 %v1886_v18 }
 0x3b1   : > { %1960 = vmatpush2.msra.mxu0 %v1885_v20 }
 0x3b2   : > { %1961 = vmatprep.subr.mxu0 %v1884_v21 }
 0x3b3   : > { %1962 = vmatpush2.msra.mxu0 %v1883_v22 }
 0x3b4   : > { %1963 = vmatprep.subr.mxu0 %v1882_v23 }
 0x3b5   : > { %1964 = vmatpush2.msra.mxu0 %v1881_v25 }
 0x3b6   : > { %1965 = vmatprep.subr.mxu0 %v1880_v26 }
 0x3b7   : > { %1966 = vmatpush2.msra.mxu0 %v1879_v28 }
 0x3b8   : > { %1967 = vmatprep.subr.mxu0 %v1878_v29 }
 0x3b9   : > { %1968 = vmatpush2.msra.mxu0 %v1877_v30 }
 0x3ba   : > { %1969 = vmatprep.subr.mxu0 %v1876_v32 }
 0x3bb   : > { %1970 = vmatpush2.msra.mxu0 %v1875_v33 }
 0x3bc   : > { %1972 = vmatmul.mubr.f32.vlgmr.msra.gmra.mxu0 %v3414_v46 }
 0x3bd   : > { %1977 = vmatprep.mubr.f32.mxu0 %v3428_v63 }
 0x3c0   : > { %1978 = vmatmul.mubr.f32.gmra.mxu0 %v3432_v3 }
 0x3c1   : > { %1983 = vmatprep.mubr.f32.mxu0 %v3447_v16 }
 0x3c4   : > { %1984 = vmatmul.mubr.f32.gmra.mxu0 %v3457_v19 }
 0x3c5   : > { %1989 = vmatprep.mubr.f32.mxu0 %v3467_v24 }
 0x3c8   : > { %1990 = vmatmul.mubr.f32.gmra.mxu0 %v3477_v27 }
 0x43b   : > { %v1667_v34 = vpop.f32.mrf.mxu0 }
 0x43d   : > { %v1669_v35 = vpop.f32.mrf.mxu0 }
 0x440   : > { %v1673_v36 = vpop.f32.mrf.mxu0 }
 0x442   : > { %v1675_v37 = vpop.f32.mrf.mxu0 }
 0x444   : > { %v1679_v38 = vpop.f32.mrf.mxu0 }
 0x446   : > { %v1681_v39 = vpop.f32.mrf.mxu0 }
 0x448   : > { %v1685_v40 = vpop.f32.mrf.mxu0 }
 0x44a   : > { %v1687_v46 = vpop.f32.mrf.mxu0 }
 0x44b   : > { %2020 = vmatprep.subr.mxu1 %v1687_v46 }
 0x44c   : > { %2021 = vmatpush1.msra.mxu1 %v1685_v40 }
 0x44d   : > { %2022 = vmatprep.subr.mxu1 %v1681_v39 }
 0x44e   : > { %2023 = vmatpush1.msra.mxu1 %v1679_v38 }
 0x44f   : > { %2024 = vmatprep.subr.mxu1 %v1675_v37 }
 0x450   : > { %2025 = vmatpush1.msra.mxu1 %v1673_v36 }
 0x451   : > { %2026 = vmatprep.subr.mxu1 %v1669_v35 }
 0x452   : > { %2027 = vmatpush1.msra.mxu1 %v1667_v34 }
 0x453   : > { %2319 = vmatmul.mubr.msk.f32.vlgmr.msra.gmra.mxu1 %vm1278_vm2, %v3013_v48 }
 0x454   : > { %2066 = vmatprep.mubr.f32.mxu1 %v2438_v31 }
 0x457   : > { %2320 = vmatmul.mubr.msk.f32.gmra.mxu1 %vm1278_vm2, %v3021_v49 }
 0x458   : > { %2072 = vmatprep.mubr.f32.mxu1 %v2438_v31 }
 0x45b   : > { %2321 = vmatmul.mubr.msk.f32.gmra.mxu1 %vm1278_vm2, %v3029_v50  ;;  %v1820_v50 = vpop.f32.mrf.mxu1 }
 0x45c   : > { %2078 = vmatprep.mubr.f32.mxu1 %v2438_v31 }
 0x45f   : > { %2322 = vmatmul.mubr.msk.f32.gmra.mxu1 %vm1278_vm2, %v3037_v52  ;;  %v1822_v52 = vpop.f32.mrf.mxu1 }
 0x460   : > { %2149 = vmatprep.mubr.f32.mxu1 %v2438_v31 }
 0x461   : > { %v1826_v41 = vpop.f32.mrf.mxu1 }
 0x463   : > { %v1828_v42 = vpop.f32.mrf.mxu1 }
 0x47c   : > { %v1973_v63 = vpop.f32.mrf.mxu0 }
 0x47e   : > { %v1975_v3 = vpop.f32.mrf.mxu0 }
 0x480   : > { %v1979_v48 = vpop.f32.mrf.mxu0 }
 0x482   : > { %v1981_v16 = vpop.f32.mrf.mxu0 }
 0x484   : > { %v1985_v19 = vpop.f32.mrf.mxu0 }
 0x486   : > { %v1987_v24 = vpop.f32.mrf.mxu0 }
 0x488   : > { %v1991_v27 = vpop.f32.mrf.mxu0 }
 0x48a   : > { %v1993_v49 = vpop.f32.mrf.mxu0 }
 0x48b   : > { %2109 = vmatprep.subr.mxu1 %v1993_v49 }
 0x48c   : > { %2110 = vmatpush1.msra.mxu1 %v1991_v27 }
 0x48d   : > { %2111 = vmatprep.subr.mxu1 %v1987_v24 }
 0x48e   : > { %2112 = vmatpush1.msra.mxu1 %v1985_v19 }
 0x48f   : > { %2113 = vmatprep.subr.mxu1 %v1981_v16 }
 0x490   : > { %2114 = vmatpush1.msra.mxu1 %v1979_v48 }
 0x491   : > { %2115 = vmatprep.subr.mxu1 %v1975_v3 }
 0x492   : > { %2116 = vmatpush1.msra.mxu1 %v1973_v63 }
 0x493   : > { %2323 = vmatmul.mubr.msk.f32.vlgmr.msra.gmra.mxu1 %vm1278_vm2, %v3045_v60  ;;  %v1832_v60 = vpop.f32.mrf.mxu1 }
 0x494   : > { %2155 = vmatprep.mubr.f32.mxu1 %v2438_v31 }
 0x495   : > { %v1834_v43 = vpop.f32.mrf.mxu1 }
 0x497   : > { %2324 = vmatmul.mubr.msk.f32.gmra.mxu1 %vm1278_vm2, %v3065_v1  ;;  %v1838_v44 = vpop.f32.mrf.mxu1 }
 0x498   : > { %2161 = vmatprep.mubr.f32.mxu1 %v2438_v31 }
 0x499   : > { %v1840_v45 = vpop.f32.mrf.mxu1 }
 0x49b   : > { %2325 = vmatmul.mubr.msk.f32.gmra.mxu1 %vm1278_vm2, %v3085_v6 }
 0x49c   : > { %2167 = vmatprep.mubr.f32.mxu1 %v2438_v31  ;;  %v2182_v31 = vld [vmem:[%s3702_s15] sm:$0x3] }
 0x49d   : > { %v2187_v57 = vrot.slane %v2182_v31, %v1497_v13  ;;  %v2191_v62 = vrot.slane %v2182_v31, %v1501_v15 }
 0x49f   : > { %2326 = vmatmul.mubr.msk.f32.gmra.mxu1 %vm1278_vm2, %v3105_v11 }
 0x513   : > { %v2062_v1 = vpop.f32.mrf.mxu1 }
 0x514   : > { %v2063_v56 = vadd.f32 %v2062_v1, %v1820_v50 }
 0x515   : > { %v2064_v47 = vpop.f32.mrf.mxu1 }
 0x516   : > { %v2065_v59 = vadd.f32 %v2064_v47, %v1822_v52 }
 0x517   : > { %v2068_v51 = vpop.f32.mrf.mxu1 }
 0x518   : > { %v2069_v4 = vadd.f32 %v2068_v51, %v1826_v41 }
 0x519   : > { %v2070_v53 = vpop.f32.mrf.mxu1 }
 0x51a   : > { %v2071_v12 = vadd.f32 %v2070_v53, %v1828_v42 }
 0x51b   : > { %v2074_v54 = vpop.f32.mrf.mxu1 }
 0x51c   : > { %v2075_v10 = vadd.f32 %v2074_v54, %v1832_v60 }
 0x51d   : > { %v2076_v6 = vpop.f32.mrf.mxu1 }
 0x51e   : > { %v2077_v20 = vadd.f32 %v2076_v6, %v1834_v43 }
 0x51f   : > { %v2080_v55 = vpop.f32.mrf.mxu1 }
 0x520   : > { %v2081_v30 = vadd.f32 %v2080_v55, %v1838_v44 }
 0x521   : > { %v2082_v11 = vpop.f32.mrf.mxu1 }
 0x522   : > { %v2083_v40 = vadd.f32 %v2082_v11, %v1840_v45 }
 0x553   : > { %v2151_v58 = vpop.f32.mrf.mxu1 }
 0x554   : > { %v2174_v61 = vadd.f32 %v2151_v58, %v2063_v56 }
 0x555   : > { %v2153_v2 = vpop.f32.mrf.mxu1 }
 0x556   : > { %v2194_v5 = vadd.f32 %v2187_v57, %v2174_v61  ;;  %v2175_v7 = vadd.f32 %v2153_v2, %v2065_v59 }
 0x557   : > { %v2157_v0 = vpop.f32.mrf.mxu1 }
 0x558   : > { %vm2202_vm11 = vcmp.ge.f32.partialorder %v2194_v5, 0.0  ;;  %v2210_v13 = vmul.f32 0.1, %v2194_v5  ;;  %v2195_v8 = vadd.f32 %v2191_v62, %v2175_v7  ;;  %v2176_v9 = vadd.f32 %v2157_v0, %v2069_v4 }
 0x559   : > { %v2159_v15 = vpop.f32.mrf.mxu1 }
 0x55a   : > { %v2218_v14 = vsel %vm2202_vm11, %v2194_v5, %v2210_v13  ;;  %vm2203_vm12 = vcmp.ge.f32.partialorder %v2195_v8, 0.0  ;;  %v2211_v17 = vmul.f32 0.1, %v2195_v8  ;;  %v2196_v18 = vadd.f32 %v2187_v57, %v2176_v9 }
 0x55b   : > { %2226 = vst [vmem:[%s3674_s27] sm:$0xff] %v2218_v14  ;;  %v2177_v21 = vadd.f32 %v2159_v15, %v2071_v12  ;;  %v2163_v22 = vpop.f32.mrf.mxu1 }
 0x55c   : > { %v2219_v23 = vsel %vm2203_vm12, %v2195_v8, %v2211_v17  ;;  %vm2204_vm13 = vcmp.ge.f32.partialorder %v2196_v18, 0.0  ;;  %v2212_v25 = vmul.f32 0.1, %v2196_v18  ;;  %v2178_v26 = vadd.f32 %v2163_v22, %v2075_v10 }
 0x55d   : > { %2227 = vst [vmem:[%s3674_s27 + $0x8] sm:$0xff] %v2219_v23  ;;  %v2197_v28 = vadd.f32 %v2191_v62, %v2177_v21  ;;  %v2165_v29 = vpop.f32.mrf.mxu1 }
 0x55e   : > { %v2220_v32 = vsel %vm2204_vm13, %v2196_v18, %v2212_v25  ;;  %v2198_v33 = vadd.f32 %v2187_v57, %v2178_v26  ;;  %v2179_v34 = vadd.f32 %v2165_v29, %v2077_v20 }
 0x55f   : > { %2228 = vst [vmem:[%s3674_s27 + $0x10] sm:$0xff] %v2220_v32  ;;  %vm2205_vm14 = vcmp.ge.f32.partialorder %v2197_v28, 0.0  ;;  %v2213_v35 = vmul.f32 0.1, %v2197_v28  ;;  %v2169_v36 = vpop.f32.mrf.mxu1 }
 0x560   : > { %vm2206_vm15 = vcmp.ge.f32.partialorder %v2198_v33, 0.0  ;;  %v2214_v37 = vmul.f32 0.1, %v2198_v33  ;;  %v2199_v38 = vadd.f32 %v2191_v62, %v2179_v34  ;;  %v2180_v39 = vadd.f32 %v2169_v36, %v2081_v30 }
 0x561   : > { %v2221_v46 = vsel %vm2205_vm14, %v2197_v28, %v2213_v35  ;;  %v2171_v63 = vpop.f32.mrf.mxu1 }
 0x562   : > { %2229 = vst [vmem:[%s3674_s27 + $0x18] sm:$0xff] %v2221_v46  ;;  %v2222_v3 = vsel %vm2206_vm15, %v2198_v33, %v2214_v37  ;;  %vm2207_vm0 = vcmp.ge.f32.partialorder %v2199_v38, 0.0  ;;  %v2215_v48 = vmul.f32 0.1, %v2199_v38  ;;  %v2200_v16 = vadd.f32 %v2187_v57, %v2180_v39 }
 0x563   : > { %2230 = vst [vmem:[%s3674_s27 + $0x20] sm:$0xff] %v2222_v3  ;;  %v2181_v19 = vadd.f32 %v2171_v63, %v2083_v40 }
 0x564   : > { %v2223_v24 = vsel %vm2207_vm0, %v2199_v38, %v2215_v48  ;;  %vm2208_vm1 = vcmp.ge.f32.partialorder %v2200_v16, 0.0  ;;  %v2216_v27 = vmul.f32 0.1, %v2200_v16 }
 0x565   : > { %2231 = vst [vmem:[%s3674_s27 + $0x28] sm:$0xff] %v2223_v24  ;;  %v2201_v49 = vadd.f32 %v2191_v62, %v2181_v19 }
 0x566   : > { %v2224_v50 = vsel %vm2208_vm1, %v2200_v16, %v2216_v27 }
 0x567   : > { %2232 = vst [vmem:[%s3674_s27 + $0x30] sm:$0xff] %v2224_v50  ;;  %vm2209_vm2 = vcmp.ge.f32.partialorder %v2201_v49, 0.0  ;;  %v2217_v52 = vmul.f32 0.1, %v2201_v49 }
 0x569   : > { %v2225_v41 = vsel %vm2209_vm2, %v2201_v49, %v2217_v52 }
 0x56a   : > { %2233 = vst [vmem:[%s3674_s27 + $0x38] sm:$0xff] %v2225_v41 }
 0x56b PF: > { %s26_s21 = sadd.s32 1, %s2436_s21  }
 0x56c   : > { %p23_p4 = scmp.ge.s32.totalorder %s26_s21, 4  }
 0x56e   :  { %25 = sbr.rel (!%p23_p4) target bundleno = 2 (0x2), region = 114 }

</bundles_post_ra>
